<compile_context>
chip_gen: v5e
topology: v5e:2x2
jax: 0.10.0
libtpu: 0.0.40
codegen_flags: <defaults>
</compile_context>

<pallas_src>
import functools
import math

import jax
import jax.numpy as jnp
from jax.experimental import pallas as pl
from jax.experimental.pallas import tpu as pltpu

LANE = 128
SUBLANE = 8
HIDDEN = 256


def _round_up(n, m):
    return ((n + m - 1) // m) * m


# --------------------------------------------------------------------------- #
# Kernel
# --------------------------------------------------------------------------- #
def vae_forward_kernel(x_ref, eps_ref,
                       w1_ref, b1_ref, w2_ref, b2_ref,
                       w3_ref, b3_ref, w4_ref, b4_ref,
                       recon_ref, head_ref):
    cd = w1_ref.dtype            # matmul operand dtype (bf16)
    Lp = eps_ref.shape[-1]       # padded latent width (multiple of 128)

    x = x_ref[...]                                                       # [TB, Dp]

    # ---- encoder: Linear(input_dim, 256) -> ReLU ----------------------------
    h = jnp.dot(x, w1_ref[...], preferred_element_type=jnp.float32) + b1_ref[...]
    h = jnp.maximum(h, 0.0).astype(cd)                                   # [TB, 256]

    # ---- fused encoder head: one N = 2*Lp matmul (mu | logvar packed) -------
    head = jnp.dot(h, w2_ref[...], preferred_element_type=jnp.float32) + b2_ref[...]
    head_ref[...] = head.astype(head_ref.dtype)                          # [TB, 2*Lp]

    mu = head[:, :Lp]            # vreg-aligned split: lanes [0, 128)
    logvar = head[:, Lp:]        # lanes [128, 256)

    # ---- reparameterize: z = mu + eps * exp(0.5 * logvar)  (f32 elementwise) -
    std = jnp.exp(0.5 * logvar)
    z = (mu + eps_ref[...].astype(jnp.float32) * std).astype(cd)         # [TB, Lp]

    # ---- decoder: Linear(latent, 256) -> ReLU -> Linear(256, input_dim) -----
    d = jnp.dot(z, w3_ref[...], preferred_element_type=jnp.float32) + b3_ref[...]
    d = jnp.maximum(d, 0.0).astype(cd)
    recon = jnp.dot(d, w4_ref[...], preferred_element_type=jnp.float32) + b4_ref[...]
    recon_ref[...] = recon.astype(recon_ref.dtype)


# --------------------------------------------------------------------------- #
# Parameter preparation (done once, outside the per-call hot path)
# --------------------------------------------------------------------------- #
def prepare_params(params, input_dim, latent_dim, compute_dtype=jnp.bfloat16):
    """Zero-pad feature dims to 128-lane multiples, build the fused mu|logvar
    head (mu columns in lanes [0, Lp), logvar in [Lp, 2*Lp)), cast matmul
    operands to `compute_dtype`.  Biases stay f32."""
    w1, b1, w2, b2, w3, b3, w4, b4 = params
    Dp = _round_up(input_dim, LANE)
    Lp = _round_up(latent_dim, LANE)

    def pad2(a, shape):
        return jnp.zeros(shape, a.dtype).at[:a.shape[0], :a.shape[1]].set(a)

    w2_p = jnp.zeros((HIDDEN, 2 * Lp), w2.dtype)
    w2_p = w2_p.at[:, :latent_dim].set(w2[:, :latent_dim])
    w2_p = w2_p.at[:, Lp:Lp + latent_dim].set(w2[:, latent_dim:])
    b2_p = jnp.zeros((1, 2 * Lp), b2.dtype)
    b2_p = b2_p.at[:, :latent_dim].set(b2[:, :latent_dim])
    b2_p = b2_p.at[:, Lp:Lp + latent_dim].set(b2[:, latent_dim:])

    return (
        pad2(w1, (Dp, HIDDEN)).astype(compute_dtype),   # w1  [Dp, 256]
        b1.astype(jnp.float32),                         # b1  [1, 256]
        w2_p.astype(compute_dtype),                     # w2  [256, 2*Lp]  (fused head)
        b2_p.astype(jnp.float32),                       # b2  [1, 2*Lp]
        pad2(w3, (Lp, HIDDEN)).astype(compute_dtype),   # w3  [Lp, 256]
        b3.astype(jnp.float32),                         # b3  [1, 256]
        pad2(w4, (HIDDEN, Dp)).astype(compute_dtype),   # w4  [256, Dp]
        pad2(b4, (1, Dp)).astype(jnp.float32),          # b4  [1, Dp]
    )


# --------------------------------------------------------------------------- #
# Wrapper
# --------------------------------------------------------------------------- #
def _choose_batch_tile(B, block_b, min_tiles):
    """Pick a sublane-aligned batch tile that minimizes pad rows while keeping
    at least `min_tiles` parallel grid steps for small batches (v7x: 2 TCs)."""
    Bs = _round_up(B, SUBLANE)
    if Bs <= block_b:
        n = max(int(min_tiles), 1)
        TB = _round_up(-(-B // n), SUBLANE)   # ceil(B/n) rounded to sublane
        TB = min(TB, Bs)
    else:
        TB = block_b
    return max(TB, SUBLANE)


def vae_forward(x, eps, padded_params, *, block_b=512, min_tiles=2,
                compute_dtype=jnp.bfloat16):
    """Returns (reconstruction, mu, logvar), matching VAE.forward.
    Intended to be called under jax.jit so the pad/cast of x and eps fuse
    into the pallas_call input path (allow_input_fusion)."""
    B, input_dim = x.shape
    latent_dim = eps.shape[-1]
    w1_p = padded_params[0]
    Dp = w1_p.shape[0]                      # padded input width
    Lp = padded_params[2].shape[1] // 2     # padded latent width

    TB = _choose_batch_tile(B, block_b, min_tiles)
    Bp = _round_up(B, TB)
    grid = (Bp // TB,)

    # Lane-dense, zero-padded inputs.  eps pad lanes are 0 so z pad lanes stay 0.
    x_p = jnp.zeros((Bp, Dp), compute_dtype).at[:B, :input_dim].set(
        x.astype(compute_dtype))
    eps_p = jnp.zeros((Bp, Lp), compute_dtype).at[:B, :latent_dim].set(
        eps.astype(compute_dtype))

    row_d = pl.BlockSpec((TB, Dp), lambda i: (i, 0))
    row_l = pl.BlockSpec((TB, Lp), lambda i: (i, 0))
    row_2l = pl.BlockSpec((TB, 2 * Lp), lambda i: (i, 0))

    def resident(p):
        # constant index_map -> weights stay resident in VMEM, no re-fetch
        return pl.BlockSpec(p.shape, lambda i: (0, 0))

    out_shape = (
        jax.ShapeDtypeStruct((Bp, Dp), jnp.float32),       # reconstruction (padded)
        jax.ShapeDtypeStruct((Bp, 2 * Lp), jnp.float32),   # packed mu|logvar (padded)
    )

    recon_p, head_p = pl.pallas_call(
        vae_forward_kernel,
        out_shape=out_shape,
        grid=grid,
        in_specs=[row_d, row_l] + [resident(p) for p in padded_params],
        out_specs=(row_d, row_2l),
        compiler_params=pltpu.CompilerParams(
            dimension_semantics=("parallel",),
            vmem_limit_bytes=32 * 1024 * 1024,   # safe on v5e/v6e (128 MiB) and v7x (64 MiB)
            allow_input_fusion=[True, True] + [False] * len(padded_params),
        ),
    )(x_p, eps_p, *padded_params)

    recon = recon_p[:B, :input_dim]
    mu = head_p[:B, :latent_dim]
    logvar = head_p[:B, Lp:Lp + latent_dim]
    return recon, mu, logvar


# --------------------------------------------------------------------------- #
# Init + plain-JAX reference
# --------------------------------------------------------------------------- #
def init_linear(key, fan_in, fan_out):
    """PyTorch-style Linear init: U(-1/sqrt(fan_in), 1/sqrt(fan_in)).
    Weight returned already transposed to [fan_in, fan_out]."""
    bound = 1.0 / math.sqrt(fan_in)
    kw, kb = jax.random.split(key)
    w = jax.random.uniform(kw, (fan_in, fan_out), jnp.float32, -bound, bound)
    b = jax.random.uniform(kb, (1, fan_out), jnp.float32, -bound, bound)
    return w, b


def vae_forward_ref(x, eps, params, compute_dtype=jnp.bfloat16):
    """Plain-JAX reference mirroring the kernel's precision (bf16 matmul
    operands, f32 accumulation, f32 elementwise, bf16-streamed eps)."""
    w1, b1, w2, b2, w3, b3, w4, b4 = params
    latent_dim = eps.shape[-1]
    cd = compute_dtype
    h = jnp.dot(x.astype(cd), w1.astype(cd), preferred_element_type=jnp.float32) + b1
    h = jnp.maximum(h, 0.0).astype(cd)
    h2 = jnp.dot(h, w2.astype(cd), preferred_element_type=jnp.float32) + b2
    mu, logvar = h2[:, :latent_dim], h2[:, latent_dim:]
    eps32 = eps.astype(cd).astype(jnp.float32)   # kernel streams eps as bf16
    z = (mu + eps32 * jnp.exp(0.5 * logvar)).astype(cd)
    d = jnp.dot(z, w3.astype(cd), preferred_element_type=jnp.float32) + b3
    d = jnp.maximum(d, 0.0).astype(cd)
    recon = jnp.dot(d, w4.astype(cd), preferred_element_type=jnp.float32) + b4
    return recon, mu, logvar


if __name__ == "__main__":
    # Small shapes consistent with the module; B deliberately not a multiple of
    # 8/128 to exercise the ragged-batch padding and multi-tile grid path.
    B, input_dim, latent_dim = 200, 32, 16

    key = jax.random.PRNGKey(0)
    k = jax.random.split(key, 6)
    x = jax.random.normal(k[0], (B, input_dim), jnp.float32)
    # TODO(synk): torch.randn_like noise is generated host-side with jax.random
    # (different RNG source than torch, same N(0,1) distribution).
    eps = jax.random.normal(k[1], (B, latent_dim), jnp.float32)

    w1, b1 = init_linear(k[2], input_dim, HIDDEN)
    w2, b2 = init_linear(k[3], HIDDEN, 2 * latent_dim)
    w3, b3 = init_linear(k[4], latent_dim, HIDDEN)
    w4, b4 = init_linear(k[5], HIDDEN, input_dim)
    params = (w1, b1, w2, b2, w3, b3, w4, b4)

    padded_params = prepare_params(params, input_dim, latent_dim)

    fwd = jax.jit(functools.partial(vae_forward, block_b=512, min_tiles=2))
    recon, mu, logvar = fwd(x, eps, padded_params)
    jax.block_until_ready((recon, mu, logvar))

    # correctness check against plain-JAX reference (same bf16/f32 precision)
    r_ref, mu_r, lv_r = vae_forward_ref(x, eps, params)
    assert recon.shape == (B, input_dim)
    assert mu.shape == (B, latent_dim) and logvar.shape == (B, latent_dim)
    assert jnp.allclose(recon, r_ref, atol=1e-2, rtol=1e-2)
    assert jnp.allclose(mu, mu_r, atol=1e-2, rtol=1e-2)
    assert jnp.allclose(logvar, lv_r, atol=1e-2, rtol=1e-2)

    print("KERNEL_OK")
</pallas_src>

<mosaic_0001>
module attributes {stable_mosaic.version = 11 : i64} {
  func.func @vae_forward_kernel(%arg0: i32, %arg1: memref<104x128xbf16, #tpu.memory_space<vmem>>, %arg2: memref<104x128xbf16, #tpu.memory_space<vmem>>, %arg3: memref<128x256xbf16, #tpu.memory_space<vmem>>, %arg4: memref<1x256xf32, #tpu.memory_space<vmem>>, %arg5: memref<256x256xbf16, #tpu.memory_space<vmem>>, %arg6: memref<1x256xf32, #tpu.memory_space<vmem>>, %arg7: memref<128x256xbf16, #tpu.memory_space<vmem>>, %arg8: memref<1x256xf32, #tpu.memory_space<vmem>>, %arg9: memref<256x128xbf16, #tpu.memory_space<vmem>>, %arg10: memref<1x128xf32, #tpu.memory_space<vmem>>, %arg11: memref<104x128xf32, #tpu.memory_space<vmem>>, %arg12: memref<104x256xf32, #tpu.memory_space<vmem>>) attributes {dimension_semantics = [#tpu.dimension_semantics<parallel>], iteration_bounds = array<i64: 2>, scalar_prefetch = 0 : i64, scratch_operands = 0 : i64, tpu.core_type = #tpu.core_type<tc>, window_params = [{transform_indices = @transform_0, window_bounds = array<i64: 104, 128>}, {transform_indices = @transform_1, window_bounds = array<i64: 104, 128>}, {pipeline_mode = #tpu.pipeline_mode<synchronous>, transform_indices = @transform_2, window_bounds = array<i64: 128, 256>}, {pipeline_mode = #tpu.pipeline_mode<synchronous>, transform_indices = @transform_3, window_bounds = array<i64: 1, 256>}, {pipeline_mode = #tpu.pipeline_mode<synchronous>, transform_indices = @transform_4, window_bounds = array<i64: 256, 256>}, {pipeline_mode = #tpu.pipeline_mode<synchronous>, transform_indices = @transform_5, window_bounds = array<i64: 1, 256>}, {pipeline_mode = #tpu.pipeline_mode<synchronous>, transform_indices = @transform_6, window_bounds = array<i64: 128, 256>}, {pipeline_mode = #tpu.pipeline_mode<synchronous>, transform_indices = @transform_7, window_bounds = array<i64: 1, 256>}, {pipeline_mode = #tpu.pipeline_mode<synchronous>, transform_indices = @transform_8, window_bounds = array<i64: 256, 128>}, {pipeline_mode = #tpu.pipeline_mode<synchronous>, transform_indices = @transform_9, window_bounds = array<i64: 1, 128>}, {transform_indices = @transform_10, window_bounds = array<i64: 104, 128>}, {transform_indices = @transform_11, window_bounds = array<i64: 104, 256>}]} {
    %c0 = arith.constant 0 : index
    %c0_0 = arith.constant 0 : index
    %0 = vector.load %arg1[%c0, %c0_0] : memref<104x128xbf16, #tpu.memory_space<vmem>>, vector<104x128xbf16>
    %c0_1 = arith.constant 0 : index
    %c0_2 = arith.constant 0 : index
    %1 = vector.load %arg3[%c0_1, %c0_2] : memref<128x256xbf16, #tpu.memory_space<vmem>>, vector<128x256xbf16>
    %cst = arith.constant dense<0.000000e+00> : vector<104x256xf32>
    %2 = tpu.matmul %0, %1, %cst {dimension_numbers = #tpu.dot_dimension_numbers<[1], [0], [0], [1], [0, 0, 1, 1], [], []>} : vector<104x128xbf16>, vector<128x256xbf16>, vector<104x256xf32> -> vector<104x256xf32>
    %c0_3 = arith.constant 0 : index
    %c0_4 = arith.constant 0 : index
    %3 = vector.load %arg4[%c0_3, %c0_4] : memref<1x256xf32, #tpu.memory_space<vmem>>, vector<1x256xf32>
    %4 = vector.broadcast %3 : vector<1x256xf32> to vector<104x256xf32>
    %5 = arith.addf %2, %4 : vector<104x256xf32>
    %cst_5 = arith.constant 0.000000e+00 : f32
    %6 = vector.broadcast %cst_5 : f32 to vector<104x256xf32>
    %7 = arith.maximumf %5, %6 : vector<104x256xf32>
    %8 = arith.truncf %7 : vector<104x256xf32> to vector<104x256xbf16>
    %c0_6 = arith.constant 0 : index
    %c0_7 = arith.constant 0 : index
    %9 = vector.load %arg5[%c0_6, %c0_7] : memref<256x256xbf16, #tpu.memory_space<vmem>>, vector<256x256xbf16>
    %cst_8 = arith.constant dense<0.000000e+00> : vector<104x256xf32>
    %10 = tpu.matmul %8, %9, %cst_8 {dimension_numbers = #tpu.dot_dimension_numbers<[1], [0], [0], [1], [0, 0, 1, 1], [], []>} : vector<104x256xbf16>, vector<256x256xbf16>, vector<104x256xf32> -> vector<104x256xf32>
    %c0_9 = arith.constant 0 : index
    %c0_10 = arith.constant 0 : index
    %11 = vector.load %arg6[%c0_9, %c0_10] : memref<1x256xf32, #tpu.memory_space<vmem>>, vector<1x256xf32>
    %12 = vector.broadcast %11 : vector<1x256xf32> to vector<104x256xf32>
    %13 = arith.addf %10, %12 : vector<104x256xf32>
    %c0_11 = arith.constant 0 : index
    %c0_12 = arith.constant 0 : index
    %14 = vector.load %arg12[%c0_11, %c0_12] : memref<104x256xf32, #tpu.memory_space<vmem>>, vector<104x256xf32>
    tpu.vector_store %arg12[%c0_11, %c0_12], %13 {strides = array<i32>} : memref<104x256xf32, #tpu.memory_space<vmem>>, vector<104x256xf32>,
    %15 = vector.extract_strided_slice %13 {offsets = [0, 0], sizes = [104, 128], strides = [1, 1]} : vector<104x256xf32> to vector<104x128xf32>
    %16 = vector.extract_strided_slice %13 {offsets = [0, 128], sizes = [104, 128], strides = [1, 1]} : vector<104x256xf32> to vector<104x128xf32>
    %cst_13 = arith.constant 5.000000e-01 : f32
    %17 = vector.broadcast %cst_13 : f32 to vector<104x128xf32>
    %18 = arith.mulf %17, %16 : vector<104x128xf32>
    %19 = math.exp %18 : vector<104x128xf32>
    %c0_14 = arith.constant 0 : index
    %c0_15 = arith.constant 0 : index
    %20 = vector.load %arg2[%c0_14, %c0_15] : memref<104x128xbf16, #tpu.memory_space<vmem>>, vector<104x128xbf16>
    %21 = arith.extf %20 : vector<104x128xbf16> to vector<104x128xf32>
    %22 = arith.mulf %21, %19 : vector<104x128xf32>
    %23 = arith.addf %15, %22 : vector<104x128xf32>
    %24 = arith.truncf %23 : vector<104x128xf32> to vector<104x128xbf16>
    %c0_16 = arith.constant 0 : index
    %c0_17 = arith.constant 0 : index
    %25 = vector.load %arg7[%c0_16, %c0_17] : memref<128x256xbf16, #tpu.memory_space<vmem>>, vector<128x256xbf16>
    %cst_18 = arith.constant dense<0.000000e+00> : vector<104x256xf32>
    %26 = tpu.matmul %24, %25, %cst_18 {dimension_numbers = #tpu.dot_dimension_numbers<[1], [0], [0], [1], [0, 0, 1, 1], [], []>} : vector<104x128xbf16>, vector<128x256xbf16>, vector<104x256xf32> -> vector<104x256xf32>
    %c0_19 = arith.constant 0 : index
    %c0_20 = arith.constant 0 : index
    %27 = vector.load %arg8[%c0_19, %c0_20] : memref<1x256xf32, #tpu.memory_space<vmem>>, vector<1x256xf32>
    %28 = vector.broadcast %27 : vector<1x256xf32> to vector<104x256xf32>
    %29 = arith.addf %26, %28 : vector<104x256xf32>
    %cst_21 = arith.constant 0.000000e+00 : f32
    %30 = vector.broadcast %cst_21 : f32 to vector<104x256xf32>
    %31 = arith.maximumf %29, %30 : vector<104x256xf32>
    %32 = arith.truncf %31 : vector<104x256xf32> to vector<104x256xbf16>
    %c0_22 = arith.constant 0 : index
    %c0_23 = arith.constant 0 : index
    %33 = vector.load %arg9[%c0_22, %c0_23] : memref<256x128xbf16, #tpu.memory_space<vmem>>, vector<256x128xbf16>
    %cst_24 = arith.constant dense<0.000000e+00> : vector<104x128xf32>
    %34 = tpu.matmul %32, %33, %cst_24 {dimension_numbers = #tpu.dot_dimension_numbers<[1], [0], [0], [1], [0, 0, 1, 1], [], []>} : vector<104x256xbf16>, vector<256x128xbf16>, vector<104x128xf32> -> vector<104x128xf32>
    %c0_25 = arith.constant 0 : index
    %c0_26 = arith.constant 0 : index
    %35 = vector.load %arg10[%c0_25, %c0_26] : memref<1x128xf32, #tpu.memory_space<vmem>>, vector<1x128xf32>
    %36 = vector.broadcast %35 : vector<1x128xf32> to vector<104x128xf32>
    %37 = arith.addf %34, %36 : vector<104x128xf32>
    %c0_27 = arith.constant 0 : index
    %c0_28 = arith.constant 0 : index
    %38 = vector.load %arg11[%c0_27, %c0_28] : memref<104x128xf32, #tpu.memory_space<vmem>>, vector<104x128xf32>
    tpu.vector_store %arg11[%c0_27, %c0_28], %37 {strides = array<i32>} : memref<104x128xf32, #tpu.memory_space<vmem>>, vector<104x128xf32>,
    return
  }
  func.func @transform_0(%arg0: i32) -> (i32, i32) {
    %c0_i32 = arith.constant 0 : i32
    %c0_i32_0 = arith.constant 0 : i32
    return %arg0, %c0_i32 : i32, i32
  }
  func.func @transform_1(%arg0: i32) -> (i32, i32) {
    %c0_i32 = arith.constant 0 : i32
    %c0_i32_0 = arith.constant 0 : i32
    return %arg0, %c0_i32 : i32, i32
  }
  func.func @transform_2(%arg0: i32) -> (i32, i32) {
    %c0_i32 = arith.constant 0 : i32
    %c0_i32_0 = arith.constant 0 : i32
    %c0_i32_1 = arith.constant 0 : i32
    return %c0_i32, %c0_i32_0 : i32, i32
  }
  func.func @transform_3(%arg0: i32) -> (i32, i32) {
    %c0_i32 = arith.constant 0 : i32
    %c0_i32_0 = arith.constant 0 : i32
    %c0_i32_1 = arith.constant 0 : i32
    return %c0_i32, %c0_i32_0 : i32, i32
  }
  func.func @transform_4(%arg0: i32) -> (i32, i32) {
    %c0_i32 = arith.constant 0 : i32
    %c0_i32_0 = arith.constant 0 : i32
    %c0_i32_1 = arith.constant 0 : i32
    return %c0_i32, %c0_i32_0 : i32, i32
  }
  func.func @transform_5(%arg0: i32) -> (i32, i32) {
    %c0_i32 = arith.constant 0 : i32
    %c0_i32_0 = arith.constant 0 : i32
    %c0_i32_1 = arith.constant 0 : i32
    return %c0_i32, %c0_i32_0 : i32, i32
  }
  func.func @transform_6(%arg0: i32) -> (i32, i32) {
    %c0_i32 = arith.constant 0 : i32
    %c0_i32_0 = arith.constant 0 : i32
    %c0_i32_1 = arith.constant 0 : i32
    return %c0_i32, %c0_i32_0 : i32, i32
  }
  func.func @transform_7(%arg0: i32) -> (i32, i32) {
    %c0_i32 = arith.constant 0 : i32
    %c0_i32_0 = arith.constant 0 : i32
    %c0_i32_1 = arith.constant 0 : i32
    return %c0_i32, %c0_i32_0 : i32, i32
  }
  func.func @transform_8(%arg0: i32) -> (i32, i32) {
    %c0_i32 = arith.constant 0 : i32
    %c0_i32_0 = arith.constant 0 : i32
    %c0_i32_1 = arith.constant 0 : i32
    return %c0_i32, %c0_i32_0 : i32, i32
  }
  func.func @transform_9(%arg0: i32) -> (i32, i32) {
    %c0_i32 = arith.constant 0 : i32
    %c0_i32_0 = arith.constant 0 : i32
    %c0_i32_1 = arith.constant 0 : i32
    return %c0_i32, %c0_i32_0 : i32, i32
  }
  func.func @transform_10(%arg0: i32) -> (i32, i32) {
    %c0_i32 = arith.constant 0 : i32
    %c0_i32_0 = arith.constant 0 : i32
    return %arg0, %c0_i32 : i32, i32
  }
  func.func @transform_11(%arg0: i32) -> (i32, i32) {
    %c0_i32 = arith.constant 0 : i32
    %c0_i32_0 = arith.constant 0 : i32
    return %arg0, %c0_i32 : i32, i32
  }
}

</mosaic_0001>

<bundles_post_ra>
// kernel: vae_forward.2
= control target key start
LH: loop header
LB: loop body
LE: loop exit
PB: predicated region body
PF: predicated region fallthrough
CT: control target
= control target key end

     0   :  { %s3868_s0 = inlined_call_operand.vmem [shape: bf16[128,256], index: 0, kind: input, shape index: {}]   ;;  %s3869_s1 = inlined_call_operand.vmem [shape: f32[1,256], index: 1, kind: input, shape index: {}]   ;;  %s3870_s2 = inlined_call_operand.vmem [shape: bf16[256,256], index: 2, kind: input, shape index: {}]   ;;  %s3871_s3 = inlined_call_operand.vmem [shape: f32[1,256], index: 3, kind: input, shape index: {}]   ;;  %s3872_s4 = inlined_call_operand.hbm [shape: bf16[128,256], index: 4, kind: input, shape index: {}]   ;;  %s3873_s5 = inlined_call_operand.vmem [shape: f32[1,256], index: 5, kind: input, shape index: {}]   ;;  %s3874_s6 = inlined_call_operand.hbm [shape: bf16[256,128], index: 6, kind: input, shape index: {}]   ;;  %s3875_s7 = inlined_call_operand.vmem [shape: f32[1,128], index: 7, kind: input, shape index: {}]   ;;  %s3876_s8 = inlined_call_operand.vmem [shape: bf16[200,16], index: 8, kind: input, shape index: {}]   ;;  %s3877_s9 = inlined_call_operand.<no memory space> [shape: bf16[], index: 9, kind: input, shape index: {}]   ;;  %s3878_s10 = inlined_call_operand.vmem [shape: bf16[200,32], index: 10, kind: input, shape index: {}]   ;;  %s3879_s11 = inlined_call_operand.vmem [shape: f32[208,128], index: 11, kind: output, shape index: {0}]   ;;  %s3880_s12 = inlined_call_operand.vmem [shape: f32[208,256], index: 12, kind: output, shape index: {1}]  }
   0x1   :  { %v18_v0 = vstv %s3877_s9 }
   0x2   :  { %v3211_v1 = vunpack.i.l.bf16 %v18_v0 }
   0x3   :  { %28 = vsyncpa [#allocation13], 0 }
   0x4   :  { %29 = vsyncpa [#allocation15], 0  ;;  %s3213_s23 = smov 0  }
   0x5 LB: > { %s335_s26 = sshll.u32 %s3872_s4, 4  ;;  %s2485_s9 = sadd.s32 4294967295, %s3135_s23   ;;  %s3135_s23 = sphi %s3213_s23, %s35_s23   ;;  %s336_s26 = int_to_ptr.hbm [resolvable:$true] %s335_s26 }
   0x6   : > { %p2487_p0 = scmp.ge.s32.totalorder %s3135_s23, 1  ;;  %p312_p1 = scmp.lt.s32.totalorder %s3135_s23, 3 }
   0x7   : > { %p3224_p2 = scmp.eq.s32.totalorder %s2485_s9, 0  ;;  %s3137_s29 = smov [#allocation12]  }
   0x8   : > { %p3228_p3 = pnand %p2487_p0, %p312_p1  ;;  %s337_s30 = sshll.u32 %s3137_s29, 4  ;;  %s338_s30 = int_to_ptr.vmem [resolvable:$true] %s337_s30 }
   0x9   : > { %s352_s15 = sshll.u32 %s3874_s6, 4  ;;  %s3138_s16 = smov [#allocation14]   ;;  %s353_s15 = int_to_ptr.hbm [resolvable:$true] %s352_s15 }
   0xa   : > { %p3009_p4 = pneg %p3228_p3  ;;  %s354_s17 = sshll.u32 %s3138_s16, 4  ;;  %s355_s17 = int_to_ptr.vmem [resolvable:$true] %s354_s17 }
   0xb   : > { %s3139_s18 = smov 128   ;;  %s3140_s19 = smov 8  }
   0xc   : > { %p3010_p5 = pnand %p3224_p2, %p3009_p4  ;;  %s3141_s20 = smov 64  }
   0xd   : > { %s3142_s21 = smov 4   ;;  %407 = sbr.rel (%p3228_p3) target bundleno = 727 (0x2d7), region = 60 }
   0xe   : > { %3012 = dma.hbm_to_vmem [thread:$0]  (!%p3010_p5), %s336_s26, 2048, %s338_s30, [#allocation13], %s3139_s18, %s3139_s18, %s3140_s19  }
   0xf   : > { %3015 = dma.hbm_to_vmem [thread:$0]  (!%p3010_p5), %s353_s15, 2048, %s355_s17, [#allocation15], %s3141_s20, %s3141_s20, %s3142_s21  }
  0x12   : > { %3126 = dma.done.wait (%p3224_p2), [#allocation13], 2048  }
  0x13   : > { %3128 = vsyncadd (%p3224_p2), [#allocation13], 4294965248 }
  0x14   : > { %3130 = dma.done.wait (%p3224_p2), [#allocation15], 2048  }
  0x15   : > { %3132 = vsyncadd (%p3224_p2), [#allocation15], 4294965248  ;;  %s3249_s22 = smul.u32 13, %s2485_s9  ;;  %v2605_v2 = vld [vmem:[%s3868_s0 + $0x70] sm:$0xf]  ;;  %v525_v12 = vlaneseq }
  0x16   : > { %v2891_v3 = vld [vmem:[%s3868_s0 + $0x74] sm:$0xf0]  ;;  %v2890_v4 = vld [vmem:[%s3868_s0 + $0x74] sm:$0xf]  ;;  %v2607_v6 = vld [vmem:[%s3868_s0 + $0x78] sm:$0xf0] }
  0x17   : > { %p477_p6 = scmp.lt.s32.totalorder %s3249_s22, 24  ;;  %v2606_v5 = vor.u32 %v2891_v3, %v2605_v2  ;;  %v2597_v7 = vld [vmem:[%s3868_s0 + $0x60] sm:$0xf]  ;;  %v2889_v8 = vld [vmem:[%s3868_s0 + $0x64] sm:$0xf0]  ;;  %v2610_v9 = vor.u32 %v2890_v4, %v2607_v6  ;;  %v3292_v19 = vand.u32 127, %v525_v12 }
  0x18   : > { %v2888_v10 = vld [vmem:[%s3868_s0 + $0x64] sm:$0xf]  ;;  %v2599_v11 = vld [vmem:[%s3868_s0 + $0x68] sm:$0xf0]  ;;  %v2598_v13 = vor.u32 %v2889_v8, %v2597_v7  ;;  %v2589_v15 = vld [vmem:[%s3868_s0 + $0x50] sm:$0xf] }
  0x19   : > { %s3253_s24 = scalar_select %p477_p6, %s3249_s22, 24  ;;  %1280 = vmatpush.bf16.msra.mxu0 %v2606_v5  ;;  %2985 = vmatpush.bf16.msra.mxu2 %v2606_v5  ;;  %v2602_v14 = vor.u32 %v2888_v10, %v2599_v11  ;;  %v2887_v16 = vld [vmem:[%s3868_s0 + $0x54] sm:$0xf0]  ;;  %v2886_v17 = vld [vmem:[%s3868_s0 + $0x54] sm:$0xf]  ;;  %vm528_vm0 = vcmp.lt.s32.totalorder %v3292_v19, 32 }
  0x1a   : > { %1323 = vmatpush.bf16.msra.mxu1 %v2610_v9  ;;  %2993 = vmatpush.bf16.msra.mxu3 %v2610_v9  ;;  %v2591_v18 = vld [vmem:[%s3868_s0 + $0x58] sm:$0xf0]  ;;  %v2590_v20 = vor.u32 %v2887_v16, %v2589_v15  ;;  %v2581_v22 = vld [vmem:[%s3868_s0 + $0x40] sm:$0xf]  ;;  %v2885_v23 = vld [vmem:[%s3868_s0 + $0x44] sm:$0xf0] }
  0x1b   : > { %s2494_s30 = sshll.u32 %s3253_s24, 2  ;;  %v2594_v21 = vor.u32 %v2886_v17, %v2591_v18  ;;  %v2884_v24 = vld [vmem:[%s3868_s0 + $0x44] sm:$0xf]  ;;  %v2583_v25 = vld [vmem:[%s3868_s0 + $0x48] sm:$0xf0]  ;;  %v2582_v27 = vor.u32 %v2885_v23, %v2581_v22  ;;  %s788_s27 = sadd.s32 12, %s3249_s22 }
  0x1c   : > { %s3299_s17 = scalar_lea.vmem %s3878_s10, %s2494_s30  ;;  %v2586_v31 = vor.u32 %v2884_v24, %v2583_v25  ;;  %v2573_v32 = vld [vmem:[%s3868_s0 + $0x30] sm:$0xf]  ;;  %v2883_v33 = vld [vmem:[%s3868_s0 + $0x34] sm:$0xf0]  ;;  %v2882_v36 = vld [vmem:[%s3868_s0 + $0x34] sm:$0xf] }
  0x1d   : > { %1281 = vmatpush.bf16.msra.mxu0 %v2598_v13  ;;  %2986 = vmatpush.bf16.msra.mxu2 %v2598_v13  ;;  %v522_v26 = vld [vmem:[%s3299_s17] sm:$0xff]   ;;  %v2500_v30 = vld [vmem:[%s3299_s17 + $0x8] sm:$0xff]   ;;  %v2575_v37 = vld [vmem:[%s3868_s0 + $0x38] sm:$0xf0]  ;;  %v2574_v44 = vor.u32 %v2883_v33, %v2573_v32  ;;  %s3366_s26 = ssub.s32 24, %s788_s27  ;;  %vm834_vm2 = vcmp.lt.s32.totalorder %v3292_v19, 16 }
  0x1e   : > { %1324 = vmatpush.bf16.msra.mxu1 %v2602_v14  ;;  %2994 = vmatpush.bf16.msra.mxu3 %v2602_v14  ;;  %v523_v28 = vunpack.c.l.bf16 %v522_v26  ;;  %v545_v29 = vunpack.c.h.bf16 %v522_v26  ;;  %v568_v34 = vunpack.c.l.bf16 %v2500_v30  ;;  %v591_v35 = vunpack.c.h.bf16 %v2500_v30  ;;  %v2565_v48 = vld [vmem:[%s3868_s0 + $0x20] sm:$0xf]  ;;  %v2881_v49 = vld [vmem:[%s3868_s0 + $0x24] sm:$0xf0]  ;;  %v2880_v50 = vld [vmem:[%s3868_s0 + $0x24] sm:$0xf] }
  0x1f   : > { %v2578_v47 = vor.u32 %v2882_v36, %v2575_v37  ;;  %v2567_v51 = vld [vmem:[%s3868_s0 + $0x28] sm:$0xf0]  ;;  %v2566_v52 = vor.u32 %v2881_v49, %v2565_v48  ;;  %v2502_v53 = vld [vmem:[%s3299_s17 + $0x10] sm:$0xff]   ;;  %v2879_v56 = vld [vmem:[%s3868_s0 + $0x14] sm:$0xf0]  ;;  %p790_p7 = scmp.lt.s32.totalorder %s3366_s26, 0 }
  0x20   : > { %v529_v38 = vsel %vm528_vm0, %v523_v28, %v3211_v1  ;;  %v551_v39 = vsel %vm528_vm0, %v545_v29, %v3211_v1  ;;  %v574_v42 = vsel %vm528_vm0, %v568_v34, %v3211_v1  ;;  %v597_v43 = vsel %vm528_vm0, %v591_v35, %v3211_v1  ;;  %v2557_v55 = vld [vmem:[%s3868_s0 + $0x10] sm:$0xf]  ;;  %v2878_v59 = vld [vmem:[%s3868_s0 + $0x14] sm:$0xf]  ;;  %v2559_v60 = vld [vmem:[%s3868_s0 + $0x18] sm:$0xf0] }
  0x21   : > { %1282 = vmatpush.bf16.msra.mxu0 %v2590_v20  ;;  %2987 = vmatpush.bf16.msra.mxu2 %v2590_v20  ;;  %v530_v40 = vpack.c.bf16 0.0, %v529_v38  ;;  %v553_v41 = vpack.c.bf16 0.0, %v551_v39  ;;  %v576_v45 = vpack.c.bf16 0.0, %v574_v42  ;;  %v599_v46 = vpack.c.bf16 0.0, %v597_v43  ;;  %v2549_v4 = vld [vmem:[%s3868_s0] sm:$0xf] }
  0x22   : > { %1325 = vmatpush.bf16.msra.mxu1 %v2594_v21  ;;  %2995 = vmatpush.bf16.msra.mxu3 %v2594_v21  ;;  %v2570_v54 = vor.u32 %v2880_v50, %v2567_v51  ;;  %v614_v57 = vunpack.c.l.bf16 %v2502_v53  ;;  %v637_v58 = vunpack.c.h.bf16 %v2502_v53  ;;  %v2558_v63 = vor.u32 %v2879_v56, %v2557_v55  ;;  %v2877_v5 = vld [vmem:[%s3868_s0 + $0x4] sm:$0xf0]  ;;  %v2876_v6 = vld [vmem:[%s3868_s0 + $0x4] sm:$0xf]  ;;  %v2551_v7 = vld [vmem:[%s3868_s0 + $0x8] sm:$0xf0] }
  0x23   : > { %533 = vst [vmem:[#allocation16] sm:$0xf] %v530_v40  ;;  %v2562_v3 = vor.u32 %v2878_v59, %v2559_v60  ;;  %v2550_v8 = vor.u32 %v2877_v5, %v2549_v4  ;;  %v2554_v9 = vor.u32 %v2876_v6, %v2551_v7  ;;  %s791_s18 = scalar_select %p790_p7, 0, 255  ;;  %v2504_v11 = vld [vmem:[%s3299_s17 + $0x18] sm:$0xff]   ;;  %v2506_v16 = vld [vmem:[%s3299_s17 + $0x20] sm:$0xff]   ;;  %v806_v55 = vstv %s3366_s26 }
  0x24   : > { %556 = vst [vmem:[#allocation16 + $0x4] sm:$0xf] %v553_v41  ;;  %v620_v61 = vsel %vm528_vm0, %v614_v57, %v3211_v1  ;;  %v643_v62 = vsel %vm528_vm0, %v637_v58, %v3211_v1  ;;  %v660_v12 = vunpack.c.l.bf16 %v2504_v11  ;;  %v683_v13 = vunpack.c.h.bf16 %v2504_v11  ;;  %v2906_v28 = vld [vmem:[%s3870_s2 + $0x74] sm:$0xf]  ;;  %v2671_v29 = vld [vmem:[%s3870_s2 + $0x78] sm:$0xf0] }
  0x25   : > { %1283 = vmatpush.bf16.msra.mxu0 %v2582_v27  ;;  %2988 = vmatpush.bf16.msra.mxu2 %v2582_v27  ;;  %579 = vst [vmem:[#allocation16 + $0x8] sm:$0xf] %v576_v45  ;;  %v622_v0 = vpack.c.bf16 0.0, %v620_v61  ;;  %v645_v2 = vpack.c.bf16 0.0, %v643_v62  ;;  %s792_s19 = sshrl.u32 %s791_s18, 1  ;;  %v706_v20 = vunpack.c.l.bf16 %v2506_v16  ;;  %v729_v21 = vunpack.c.h.bf16 %v2506_v16  ;;  %v2508_v27 = vld [vmem:[%s3299_s17 + $0x28] sm:$0xff]  }
  0x26   : > { %1326 = vmatpush.bf16.msra.mxu1 %v2586_v31  ;;  %2996 = vmatpush.bf16.msra.mxu3 %v2586_v31  ;;  %602 = vst [vmem:[#allocation16 + $0xc] sm:$0xf] %v599_v46  ;;  %s793_s20 = sor.u32 %s792_s19, %s791_s18  ;;  %v666_v14 = vsel %vm528_vm0, %v660_v12, %v3211_v1  ;;  %v689_v15 = vsel %vm528_vm0, %v683_v13, %v3211_v1  ;;  %v752_v31 = vunpack.c.l.bf16 %v2508_v27  ;;  %v775_v32 = vunpack.c.h.bf16 %v2508_v27  ;;  %v2922_v34 = vld [vmem:[%s3870_s2 + $0xf4] sm:$0xf]  ;;  %v2735_v35 = vld [vmem:[%s3870_s2 + $0xf8] sm:$0xf0] }
  0x27   : > { %625 = vst [vmem:[#allocation16 + $0x10] sm:$0xf] %v622_v0  ;;  %v668_v17 = vpack.c.bf16 0.0, %v666_v14  ;;  %v691_v18 = vpack.c.bf16 0.0, %v689_v15  ;;  %s794_s21 = sand.u32 85, %s793_s20  ;;  %v712_v22 = vsel %vm528_vm0, %v706_v20, %v3211_v1  ;;  %v735_v23 = vsel %vm528_vm0, %v729_v21, %v3211_v1  ;;  %p501_p8 = scmp.lt.s32.totalorder %s3249_s22, 25 }
  0x28   : > { %648 = vst [vmem:[#allocation16 + $0x14] sm:$0xf] %v645_v2  ;;  %v714_v24 = vpack.c.bf16 0.0, %v712_v22  ;;  %v737_v25 = vpack.c.bf16 0.0, %v735_v23  ;;  %s795_s25 = sshrl.u32 %s794_s21, 1  ;;  %v2674_v33 = vor.u32 %v2906_v28, %v2671_v29  ;;  %v2738_v36 = vor.u32 %v2922_v34, %v2735_v35 }
  0x29   : > { %1284 = vmatpush.bf16.msra.mxu0 %v2574_v44  ;;  %2989 = vmatpush.bf16.msra.mxu2 %v2574_v44  ;;  %671 = vst [vmem:[#allocation16 + $0x18] sm:$0xf] %v668_v17  ;;  %s796_s28 = sor.u32 %s795_s25, %s794_s21  ;;  %v2904_v37 = vld [vmem:[%s3870_s2 + $0x64] sm:$0xf]  ;;  %v2663_v38 = vld [vmem:[%s3870_s2 + $0x68] sm:$0xf0]  ;;  %v758_v40 = vsel %vm528_vm0, %v752_v31, %v3211_v1  ;;  %v781_v41 = vsel %vm528_vm0, %v775_v32, %v3211_v1 }
  0x2a   : > { %1327 = vmatpush.bf16.msra.mxu1 %v2578_v47  ;;  %2997 = vmatpush.bf16.msra.mxu3 %v2578_v47  ;;  %694 = vst [vmem:[#allocation16 + $0x1c] sm:$0xf] %v691_v18  ;;  %s797_s29 = sand.u32 51, %s796_s28  ;;  %v2920_v39 = vld [vmem:[%s3870_s2 + $0xe4] sm:$0xf]  ;;  %v760_v44 = vpack.c.bf16 0.0, %v758_v40  ;;  %v2666_v46 = vor.u32 %v2904_v37, %v2663_v38 }
  0x2b   : > { %v2870_v10 = vld [vmem:[#allocation16] sm:$0xff]  ;;  %717 = vst [vmem:[#allocation16 + $0x20] sm:$0xf] %v714_v24  ;;  %s798_s15 = sshrl.u32 %s797_s29, 2  ;;  %v2727_v42 = vld [vmem:[%s3870_s2 + $0xe8] sm:$0xf0] }
  0x2c   : > { %740 = vst [vmem:[#allocation16 + $0x24] sm:$0xf] %v737_v25  ;;  %v2902_v43 = vld [vmem:[%s3870_s2 + $0x54] sm:$0xf]  ;;  %s3435_s20 = sor.u32 %s798_s15, %s797_s29  ;;  %v783_v45 = vpack.c.bf16 0.0, %v781_v41  ;;  %v2730_v47 = vor.u32 %v2920_v39, %v2727_v42  ;;  %vm3483_vm1 = vcmp.lt.s32.totalorder %v806_v55, 0 }
  0x2d   : > { %1285 = vmatpush.bf16.msra.mxu0 %v2566_v52  ;;  %2990 = vmatpush.bf16.msra.mxu2 %v2566_v52  ;;  %v2871_v26 = vld [vmem:[#allocation16 + $0x8] sm:$0xff]  ;;  %v2655_v48 = vld [vmem:[%s3870_s2 + $0x58] sm:$0xf0]  ;;  %v2918_v49 = vld [vmem:[%s3870_s2 + $0xd4] sm:$0xf]  ;;  %s800_s21 = sand.u32 15, %s3435_s20  ;;  %s3471_s20 = scalar_lea.vmem %s3876_s8, %s2494_s30 }
  0x2e   : > { %1328 = vmatpush.bf16.msra.mxu1 %v2570_v54  ;;  %2998 = vmatpush.bf16.msra.mxu3 %v2570_v54  ;;  %v2719_v50 = vld [vmem:[%s3870_s2 + $0xd8] sm:$0xf0]  ;;  %v2669_v51 = vld [vmem:[%s3870_s2 + $0x70] sm:$0xf]  ;;  %v2907_v52 = vld [vmem:[%s3870_s2 + $0x74] sm:$0xf0]  ;;  %v2658_v59 = vor.u32 %v2902_v43, %v2655_v48 }
  0x2f   : > { %763 = vst [vmem:[#allocation16 + $0x28] sm:$0xf] %v760_v44  ;;  %v2670_v53 = vor.u32 %v2907_v52, %v2669_v51  ;;  %v2733_v54 = vld [vmem:[%s3870_s2 + $0xf0] sm:$0xf]  ;;  %v2900_v56 = vld [vmem:[%s3870_s2 + $0x44] sm:$0xf]  ;;  %v2722_v60 = vor.u32 %v2918_v49, %v2719_v50 }
  0x30   : > { %786 = vst [vmem:[#allocation16 + $0x2c] sm:$0xf] %v783_v45  ;;  %v2647_v57 = vld [vmem:[%s3870_s2 + $0x48] sm:$0xf0]  ;;  %v2923_v58 = vld [vmem:[%s3870_s2 + $0xf4] sm:$0xf0] }
  0x31   : > { %1286 = vmatpush.bf16.msra.mxu0 %v2558_v63  ;;  %2991 = vmatpush.bf16.msra.mxu2 %v2558_v63  ;;  %v2734_v61 = vor.u32 %v2923_v58, %v2733_v54  ;;  %v2916_v62 = vld [vmem:[%s3870_s2 + $0xc4] sm:$0xf]  ;;  %v2661_v63 = vld [vmem:[%s3870_s2 + $0x60] sm:$0xf]  ;;  %v2905_v0 = vld [vmem:[%s3870_s2 + $0x64] sm:$0xf0]  ;;  %v2650_v15 = vor.u32 %v2900_v56, %v2647_v57 }
  0x32   : > { %1329 = vmatpush.bf16.msra.mxu1 %v2562_v3  ;;  %2999 = vmatpush.bf16.msra.mxu3 %v2562_v3  ;;  %v2662_v2 = vor.u32 %v2905_v0, %v2661_v63  ;;  %v2510_v3 = vld [vmem:[%s3299_s17 + $0x30] sm:%s800_s21]  ;;  %v2711_v6 = vld [vmem:[%s3870_s2 + $0xc8] sm:$0xf0]  ;;  %v2639_v14 = vld [vmem:[%s3870_s2 + $0x38] sm:$0xf0]  ;;  %s3886_s22 = smov (!%p501_p8, %s3249_s22), 25 }
  0x33   : > { %v2874_v30 = vld [vmem:[#allocation16 + $0x20] sm:$0xff]  ;;  %v2522_v5 = vld [vmem:[%s3471_s20 + $0x30] sm:%s800_s21]  ;;  %v802_v7 = vunpack.c.l.bf16 %v2510_v3  ;;  %v2903_v20 = vld [vmem:[%s3870_s2 + $0x54] sm:$0xf0]  ;;  %v2714_v22 = vor.u32 %v2916_v62, %v2711_v6  ;;  %s2869_s26 = sshll.u32 %s3886_s22, 4  ;;  %s2496_s28 = sshll.u32 %s3886_s22, 3 }
  0x34   : > { %v2872_v11 = vld [vmem:[#allocation16 + $0x10] sm:$0xff]  ;;  %v2703_v25 = vld [vmem:[%s3870_s2 + $0xb8] sm:$0xf0]  ;;  %v2919_v27 = vld [vmem:[%s3870_s2 + $0xd4] sm:$0xf0]  ;;  %s3709_s19 = scalar_lea.vmem %s3880_s12, %s2869_s26  ;;  %s3838_s29 = scalar_lea.vmem %s3879_s11, %s2496_s28 }
  0x35   : > { %1287 = vmatpush.bf16.msra.mxu0 %v2550_v8  ;;  %2992 = vmatpush.bf16.msra.mxu2 %v2550_v8  ;;  %v1108_v8 = vunpack.c.l.bf16 %v2522_v5  ;;  %v2898_v13 = vld [vmem:[%s3870_s2 + $0x34] sm:$0xf]  ;;  %v808_v16 = vsel %vm3483_vm1, %v3211_v1, %v802_v7  ;;  %v2653_v18 = vld [vmem:[%s3870_s2 + $0x50] sm:$0xf]  ;;  %v2901_v31 = vld [vmem:[%s3870_s2 + $0x44] sm:$0xf0] }
  0x36   : > { %1330 = vmatpush.bf16.msra.mxu1 %v2554_v9  ;;  %3000 = vmatpush.bf16.msra.mxu3 %v2554_v9  ;;  %v2725_v9 = vld [vmem:[%s3870_s2 + $0xe0] sm:$0xf]  ;;  %v2717_v21 = vld [vmem:[%s3870_s2 + $0xd0] sm:$0xf]  ;;  %v813_v23 = vsel %vm528_vm0, %v808_v16, %v3211_v1  ;;  %v2914_v24 = vld [vmem:[%s3870_s2 + $0xb4] sm:$0xf]  ;;  %v2642_v34 = vor.u32 %v2898_v13, %v2639_v14 }
  0x37   : > { %v3509_v17 = vsel %vm3483_vm1, %v3211_v1, %v1108_v8  ;;  %v815_v28 = vpack.c.bf16 0.0, %v813_v23  ;;  %v2718_v29 = vor.u32 %v2919_v27, %v2717_v21  ;;  %v2875_v32 = vld [vmem:[#allocation16 + $0x28] sm:$0xff]  ;;  %v2896_v37 = vld [vmem:[%s3870_s2 + $0x24] sm:$0xf]  ;;  %v2637_v43 = vld [vmem:[%s3870_s2 + $0x30] sm:$0xf] }
  0x38   : > { %1288 = vmatmul.bf16.vlgmr.msra.gmra.mxu0 %v2870_v10  ;;  %1308 = vmatmul.bf16.vlgmr.msra.gmra.mxu2 %v2874_v30  ;;  %v2917_v35 = vld [vmem:[%s3870_s2 + $0xc4] sm:$0xf0]  ;;  %v2631_v38 = vld [vmem:[%s3870_s2 + $0x28] sm:$0xf0]  ;;  %v2912_v40 = vld [vmem:[%s3870_s2 + $0xa4] sm:$0xf] }
  0x39   : > { %1331 = vmatmul.bf16.vlgmr.msra.gmra.mxu1 %v2870_v10  ;;  %1351 = vmatmul.bf16.vlgmr.msra.gmra.mxu3 %v2874_v30  ;;  %v2921_v10 = vld [vmem:[%s3870_s2 + $0xe4] sm:$0xf0]  ;;  %v2645_v30 = vld [vmem:[%s3870_s2 + $0x40] sm:$0xf]  ;;  %818 = vst [vmem:[#allocation16 + $0x30] sm:$0xf] %v815_v28  ;;  %v2634_v45 = vor.u32 %v2896_v37, %v2631_v38 }
  0x3a   : > { %1690 = vmatpush.bf16.msrb.mxu0 %v2674_v33  ;;  %1733 = vmatpush.bf16.msrb.mxu1 %v2738_v36  ;;  %v2726_v12 = vor.u32 %v2921_v10, %v2725_v9  ;;  %v2709_v33 = vld [vmem:[%s3870_s2 + $0xc0] sm:$0xf]  ;;  %v2706_v36 = vor.u32 %v2914_v24, %v2703_v25  ;;  %v2646_v39 = vor.u32 %v2901_v31, %v2645_v30  ;;  %v2695_v41 = vld [vmem:[%s3870_s2 + $0xa8] sm:$0xf0]  ;;  %v2899_v44 = vld [vmem:[%s3870_s2 + $0x34] sm:$0xf0] }
  0x3b   : > { %1604 = vmatpush.bf16.msrb.mxu2 %v2670_v53  ;;  %1647 = vmatpush.bf16.msrb.mxu3 %v2734_v61  ;;  %v2710_v42 = vor.u32 %v2917_v35, %v2709_v33  ;;  %v2894_v48 = vld [vmem:[%s3870_s2 + $0x14] sm:$0xf]  ;;  %v2623_v49 = vld [vmem:[%s3870_s2 + $0x18] sm:$0xf0]  ;;  %v2701_v55 = vld [vmem:[%s3870_s2 + $0xb0] sm:$0xf] }
  0x3c   : > { %v2626_v51 = vor.u32 %v2894_v48, %v2623_v49  ;;  %v2873_v52 = vld [vmem:[#allocation16 + $0x18] sm:$0xff]  ;;  %v2629_v58 = vld [vmem:[%s3870_s2 + $0x20] sm:$0xf]  ;;  %v2913_v62 = vld [vmem:[%s3870_s2 + $0xa4] sm:$0xf0] }
  0x3d   : > { %v2915_v56 = vld [vmem:[%s3870_s2 + $0xb4] sm:$0xf0]  ;;  %v2693_v61 = vld [vmem:[%s3870_s2 + $0xa0] sm:$0xf]  ;;  %v2910_v63 = vld [vmem:[%s3870_s2 + $0x94] sm:$0xf] }
  0x3e   : > { %1691 = vmatpush.bf16.msrb.mxu0 %v2666_v46  ;;  %1734 = vmatpush.bf16.msrb.mxu1 %v2730_v47  ;;  %v2698_v46 = vor.u32 %v2912_v40, %v2695_v41  ;;  %v2638_v47 = vor.u32 %v2899_v44, %v2637_v43  ;;  %v2702_v57 = vor.u32 %v2915_v56, %v2701_v55  ;;  %v2687_v0 = vld [vmem:[%s3870_s2 + $0x98] sm:$0xf0]  ;;  %v2892_v3 = vld [vmem:[%s3870_s2 + $0x4] sm:$0xf]  ;;  %v2615_v5 = vld [vmem:[%s3870_s2 + $0x8] sm:$0xf0] }
  0x3f   : > { %1605 = vmatpush.bf16.msrb.mxu2 %v2662_v2  ;;  %1648 = vmatpush.bf16.msrb.mxu3 %v2726_v12  ;;  %v2694_v2 = vor.u32 %v2913_v62, %v2693_v61  ;;  %v2690_v4 = vor.u32 %v2910_v63, %v2687_v0  ;;  %v2618_v6 = vor.u32 %v2892_v3, %v2615_v5  ;;  %v2621_v7 = vld [vmem:[%s3870_s2 + $0x10] sm:$0xf]  ;;  %v2895_v8 = vld [vmem:[%s3870_s2 + $0x14] sm:$0xf0]  ;;  %v2908_v13 = vld [vmem:[%s3870_s2 + $0x84] sm:$0xf] }
  0x40   : > { %v1137_v50 = vld [vmem:[#allocation16 + $0x30] sm:$0xf]  ;;  %v2622_v10 = vor.u32 %v2895_v8, %v2621_v7  ;;  %v2679_v14 = vld [vmem:[%s3870_s2 + $0x88] sm:$0xf0]  ;;  %v2909_v21 = vld [vmem:[%s3870_s2 + $0x84] sm:$0xf0] }
  0x41   : > { %v1185_v53 = vunpack.c.l.b16 %v1137_v50  ;;  %v2685_v9 = vld [vmem:[%s3870_s2 + $0x90] sm:$0xf]  ;;  %v2682_v16 = vor.u32 %v2908_v13, %v2679_v14  ;;  %v1154_v24 = vld [vmem:[%s3869_s1] sm:$0x3]  ;;  %v2939_v56 = vld [vmem:[#allocation12 + $0x74] sm:$0xf0] }
  0x42   : > { %1692 = vmatpush.bf16.msrb.mxu0 %v2658_v59  ;;  %1735 = vmatpush.bf16.msrb.mxu1 %v2722_v60  ;;  %v2897_v59 = vld [vmem:[%s3870_s2 + $0x24] sm:$0xf0]  ;;  %v3631_v27 = vperm.slane %v1154_v24, 0  ;;  %v3633_v28 = vperm.slane %v1154_v24, 1  ;;  %v2797_v55 = vld [vmem:[#allocation12 + $0x70] sm:$0xf] }
  0x43   : > { %1649 = vmatpush.bf16.msrb.mxu3 %v2718_v29  ;;  %v1192_v54 = vpack.c.b16 %v1185_v53, %v1185_v53  ;;  %v2630_v60 = vor.u32 %v2897_v59, %v2629_v58  ;;  %v2798_v58 = vor.u32 %v2939_v56, %v2797_v55  ;;  %v2938_v59 = vld [vmem:[#allocation12 + $0x74] sm:$0xf]  ;;  %v2789_v0 = vld [vmem:[#allocation12 + $0x60] sm:$0xf]  ;;  %v2936_v3 = vld [vmem:[#allocation12 + $0x64] sm:$0xf] }
  0x46   : > { %1693 = vmatpush.bf16.msrb.mxu0 %v2650_v15  ;;  %1736 = vmatpush.bf16.msrb.mxu1 %v2714_v22  ;;  %v2613_v15 = vld [vmem:[%s3870_s2] sm:$0xf] }
  0x47   : > { %1650 = vmatpush.bf16.msrb.mxu3 %v2710_v42 }
  0x48   : > { %1293 = vmatmul.bf16.gmra.mxu0 %v2871_v26  ;;  %1313 = vmatmul.bf16.gmra.mxu2 %v2875_v32 }
  0x49   : > { %1336 = vmatmul.bf16.gmra.mxu1 %v2871_v26  ;;  %v2654_v26 = vor.u32 %v2903_v20, %v2653_v18  ;;  %1356 = vmatmul.bf16.gmra.mxu3 %v2875_v32  ;;  %v2893_v18 = vld [vmem:[%s3870_s2 + $0x4] sm:$0xf0]  ;;  %v2677_v20 = vld [vmem:[%s3870_s2 + $0x80] sm:$0xf] }
  0x4a   : > { %1694 = vmatpush.bf16.msrb.mxu0 %v2642_v34  ;;  %1737 = vmatpush.bf16.msrb.mxu1 %v2706_v36  ;;  %v2614_v22 = vor.u32 %v2893_v18, %v2613_v15  ;;  %v2678_v23 = vor.u32 %v2909_v21, %v2677_v20 }
  0x4b   : > { %1606 = vmatpush.bf16.msrb.mxu2 %v2654_v26  ;;  %1651 = vmatpush.bf16.msrb.mxu3 %v2702_v57 }
  0x4e   : > { %1695 = vmatpush.bf16.msrb.mxu0 %v2634_v45  ;;  %1738 = vmatpush.bf16.msrb.mxu1 %v2698_v46 }
  0x4f   : > { %1607 = vmatpush.bf16.msrb.mxu2 %v2646_v39  ;;  %1652 = vmatpush.bf16.msrb.mxu3 %v2694_v2  ;;  %v2937_v2 = vld [vmem:[#allocation12 + $0x64] sm:$0xf0] }
  0x50   : > { %v2790_v5 = vor.u32 %v2937_v2, %v2789_v0 }
  0x52   : > { %1696 = vmatpush.bf16.msrb.mxu0 %v2626_v51  ;;  %1739 = vmatpush.bf16.msrb.mxu1 %v2690_v4 }
  0x53   : > { %1608 = vmatpush.bf16.msrb.mxu2 %v2638_v47 }
  0x56   : > { %1697 = vmatpush.bf16.msrb.mxu0 %v2618_v6  ;;  %1740 = vmatpush.bf16.msrb.mxu1 %v2682_v16  ;;  %v2791_v6 = vld [vmem:[#allocation12 + $0x68] sm:$0xf0] }
  0x57   : > { %1609 = vmatpush.bf16.msrb.mxu2 %v2630_v60  ;;  %v2799_v60 = vld [vmem:[#allocation12 + $0x78] sm:$0xf0]  ;;  %v2794_v7 = vor.u32 %v2936_v3, %v2791_v6 }
  0x58   : > { %1298 = vmatmul.bf16.gmra.mxu0 %v2872_v11  ;;  %1318 = vmatmul.bf16.gmra.mxu2 %v1192_v54  ;;  %v2802_v62 = vor.u32 %v2938_v59, %v2799_v60  ;;  %v2765_v59 = vld [vmem:[#allocation12 + $0x30] sm:$0xf]  ;;  %v2931_v60 = vld [vmem:[#allocation12 + $0x34] sm:$0xf0] }
  0x59   : > { %1341 = vmatmul.bf16.gmra.mxu1 %v2872_v11  ;;  %1361 = vmatmul.bf16.gmra.mxu3 %v1192_v54  ;;  %v2911_v11 = vld [vmem:[%s3870_s2 + $0x94] sm:$0xf0]  ;;  %v2766_v0 = vor.u32 %v2931_v60, %v2765_v59  ;;  %v2741_v59 = vld [vmem:[#allocation12] sm:$0xf]  ;;  %v2925_v60 = vld [vmem:[#allocation12 + $0x4] sm:$0xf0] }
  0x5a   : > { %v2686_v12 = vor.u32 %v2911_v11, %v2685_v9 }
  0x5b   : > { %1610 = vmatpush.bf16.msrb.mxu2 %v2622_v10 }
  0x5c   : > { %1653 = vmatpush.bf16.msrb.mxu3 %v2686_v12 }
  0x5f   : > { %1611 = vmatpush.bf16.msrb.mxu2 %v2614_v22 }
  0x60   : > { %1654 = vmatpush.bf16.msrb.mxu3 %v2678_v23 }
  0x63   : > { %2002 = vmatpush.bf16.msra.mxu2 %v2798_v58  ;;  %v2775_v58 = vld [vmem:[#allocation12 + $0x48] sm:$0xf0] }
  0x64   : > { %2045 = vmatpush.bf16.msra.mxu3 %v2802_v62  ;;  %v2930_v62 = vld [vmem:[#allocation12 + $0x34] sm:$0xf] }
  0x67   : > { %2003 = vmatpush.bf16.msra.mxu2 %v2790_v5 }
  0x68   : > { %1303 = vmatmul.bf16.gmra.mxu0 %v2873_v52  ;;  %2046 = vmatpush.bf16.msra.mxu3 %v2794_v7 }
  0x69   : > { %1346 = vmatmul.bf16.gmra.mxu1 %v2873_v52 }
  0xb5   : > { %v1289_v25 = vpop.f32.mrf.mxu0 }
  0xb6   : > { %v1332_v26 = vpop.f32.mrf.mxu1  ;;  %v1290_v29 = vadd.f32 %v1289_v25, %v3631_v27 }
  0xb7   : > { %v1333_v30 = vadd.f32 %v1332_v26, %v3633_v28 }
  0xb8   : > { %v1366_v35 = vmax.f32 %v1290_v29, 0.0  ;;  %v2781_v29 = vld [vmem:[#allocation12 + $0x50] sm:$0xf] }
  0xb9   : > { %v1367_v37 = vmax.f32 %v1333_v30, 0.0  ;;  %v2935_v30 = vld [vmem:[#allocation12 + $0x54] sm:$0xf0] }
  0xbb   : > { %v3643_v49 = vpop.f32.mrf.mxu2 }
  0xbc   : > { %v3645_v52 = vpop.f32.mrf.mxu3  ;;  %v1310_v3 = vadd.f32 %v3643_v49, %v3631_v27  ;;  %v2757_v49 = vld [vmem:[#allocation12 + $0x20] sm:$0xf] }
  0xbd   : > { %v1291_v31 = vpop.f32.mrf.mxu0  ;;  %v1353_v5 = vadd.f32 %v3645_v52, %v3633_v28  ;;  %v2928_v52 = vld [vmem:[#allocation12 + $0x24] sm:$0xf] }
  0xbe   : > { %v1292_v32 = vadd.f32 %v1291_v31, %v3631_v27  ;;  %v1334_v33 = vpop.f32.mrf.mxu1  ;;  %v2934_v31 = vld [vmem:[#allocation12 + $0x54] sm:$0xf] }
  0xbf   : > { %v1335_v34 = vadd.f32 %v1334_v33, %v3633_v28  ;;  %v2782_v33 = vor.u32 %v2935_v30, %v2781_v29 }
  0xc0   : > { %v1368_v36 = vmax.f32 %v1292_v32, 0.0 }
  0xc1   : > { %v1369_v38 = vmax.f32 %v1335_v34, 0.0  ;;  %v2783_v34 = vld [vmem:[#allocation12 + $0x58] sm:$0xf0]  ;;  %2004 = vmatpush.bf16.msra.mxu2 %v2782_v33 }
  0xc2   : > { %v1392_v39 = vpack.c.bf16 %v1368_v36, %v1366_v35  ;;  %v2786_v35 = vor.u32 %v2934_v31, %v2783_v34 }
  0xc3   : > { %v1393_v40 = vpack.c.bf16 %v1369_v38, %v1367_v37  ;;  %v3647_v8 = vpop.f32.mrf.mxu2 }
  0xc4   : > { %1612 = vmatmul.bf16.vlgmr.msrb.gmra.mxu2 %v1392_v39  ;;  %1698 = vmatmul.bf16.vlgmr.msrb.gmra.mxu0 %v1392_v39  ;;  %v3649_v9 = vpop.f32.mrf.mxu3 }
  0xc5   : > { %1655 = vmatmul.bf16.vlgmr.msrb.gmra.mxu3 %v1393_v40  ;;  %1741 = vmatmul.bf16.vlgmr.msrb.gmra.mxu1 %v1393_v40  ;;  %v1294_v41 = vpop.f32.mrf.mxu0  ;;  %v1355_v6 = vadd.f32 %v3649_v9, %v3633_v28 }
  0xc6   : > { %v1337_v42 = vpop.f32.mrf.mxu1  ;;  %v1295_v43 = vadd.f32 %v1294_v41, %v3631_v27  ;;  %2047 = vmatpush.bf16.msra.mxu3 %v2786_v35 }
  0xc7   : > { %v1338_v44 = vadd.f32 %v1337_v42, %v3633_v28 }
  0xc8   : > { %v1370_v50 = vmax.f32 %v1295_v43, 0.0 }
  0xc9   : > { %v1371_v53 = vmax.f32 %v1338_v44, 0.0 }
  0xcb   : > { %v3655_v23 = vpop.f32.mrf.mxu2 }
  0xcc   : > { %v3657_v25 = vpop.f32.mrf.mxu3 }
  0xcd   : > { %v1296_v45 = vpop.f32.mrf.mxu0 }
  0xce   : > { %v1297_v46 = vadd.f32 %v1296_v45, %v3631_v27  ;;  %v1339_v47 = vpop.f32.mrf.mxu1 }
  0xcf   : > { %v1340_v48 = vadd.f32 %v1339_v47, %v3633_v28 }
  0xd0   : > { %v1372_v51 = vmax.f32 %v1297_v46, 0.0 }
  0xd1   : > { %v1373_v54 = vmax.f32 %v1340_v48, 0.0 }
  0xd2   : > { %v1394_v57 = vpack.c.bf16 %v1372_v51, %v1370_v50  ;;  %v2773_v51 = vld [vmem:[#allocation12 + $0x40] sm:$0xf] }
  0xd3   : > { %v1395_v61 = vpack.c.bf16 %v1373_v54, %v1371_v53  ;;  %v1316_v37 = vpop.f32.mrf.mxu2  ;;  %v2933_v53 = vld [vmem:[#allocation12 + $0x44] sm:$0xf0]  ;;  %v2932_v54 = vld [vmem:[#allocation12 + $0x44] sm:$0xf] }
  0xd4   : > { %1617 = vmatmul.bf16.gmra.mxu2 %v1394_v57  ;;  %1703 = vmatmul.bf16.gmra.mxu0 %v1394_v57  ;;  %v1359_v40 = vpop.f32.mrf.mxu3  ;;  %v2774_v57 = vor.u32 %v2933_v53, %v2773_v51  ;;  %v2512_v51 = vld [vmem:[%s3471_s20 + $0x8] sm:$0xff]  }
  0xd5   : > { %1660 = vmatmul.bf16.gmra.mxu3 %v1395_v61  ;;  %1746 = vmatmul.bf16.gmra.mxu1 %v1395_v61  ;;  %v1299_v63 = vpop.f32.mrf.mxu0  ;;  %v2778_v61 = vor.u32 %v2932_v54, %v2775_v58  ;;  %v874_v53 = vunpack.c.l.bf16 %v2512_v51  ;;  %v897_v54 = vunpack.c.h.bf16 %v2512_v51 }
  0xd6   : > { %v1342_v4 = vpop.f32.mrf.mxu1  ;;  %v1300_v10 = vadd.f32 %v1299_v63, %v3631_v27  ;;  %v2767_v63 = vld [vmem:[#allocation12 + $0x38] sm:$0xf0]  ;;  %2005 = vmatpush.bf16.msra.mxu2 %v2774_v57 }
  0xd7   : > { %v1343_v11 = vadd.f32 %v1342_v4, %v3633_v28  ;;  %2048 = vmatpush.bf16.msra.mxu3 %v2778_v61  ;;  %v2770_v2 = vor.u32 %v2930_v62, %v2767_v63  ;;  %v1312_v4 = vadd.f32 %v3647_v8, %v3631_v27  ;;  %v2929_v8 = vld [vmem:[#allocation12 + $0x24] sm:$0xf0]  ;;  %v2924_v61 = vld [vmem:[#allocation12 + $0x4] sm:$0xf]  ;;  %v1438_v62 = vld [vmem:[%s3871_s3] sm:$0x3]  ;;  %v2742_v63 = vor.u32 %v2925_v60, %v2741_v59 }
  0xd8   : > { %v1374_v16 = vmax.f32 %v1300_v10, 0.0 }
  0xd9   : > { %v1375_v20 = vmax.f32 %v1343_v11, 0.0  ;;  %v1382_v11 = vmax.f32 %v1310_v3, 0.0  ;;  %v3701_v3 = vperm.slane %v1438_v62, 1 }
  0xda   : > { %2006 = vmatpush.bf16.msra.mxu2 %v2766_v0  ;;  %v2743_v0 = vld [vmem:[#allocation12 + $0x8] sm:$0xf0] }
  0xdb   : > { %v1319_v55 = vpop.f32.mrf.mxu2  ;;  %2049 = vmatpush.bf16.msra.mxu3 %v2770_v2  ;;  %v2746_v2 = vor.u32 %v2924_v61, %v2743_v0 }
  0xdc   : > { %v1362_v56 = vpop.f32.mrf.mxu3 }
  0xdd   : > { %v1301_v12 = vpop.f32.mrf.mxu0  ;;  %v1363_v35 = vadd.f32 %v1362_v56, %v3633_v28  ;;  %v903_v56 = vsel %vm834_vm2, %v897_v54, %v3211_v1 }
  0xde   : > { %v1302_v13 = vadd.f32 %v1301_v12, %v3631_v27  ;;  %v1344_v14 = vpop.f32.mrf.mxu1  ;;  %v1384_v12 = vmax.f32 %v1312_v4, 0.0  ;;  %v905_v58 = vpack.c.bf16 0.0, %v903_v56 }
  0xdf   : > { %v1345_v15 = vadd.f32 %v1344_v14, %v3633_v28  ;;  %v1385_v14 = vmax.f32 %v1355_v6, 0.0 }
  0xe0   : > { %v1376_v18 = vmax.f32 %v1302_v13, 0.0  ;;  %v1383_v13 = vmax.f32 %v1353_v5, 0.0  ;;  %908 = vst [vmem:[#allocation17 + $0xc] sm:$0xf] %v905_v58 }
  0xe1   : > { %v1377_v21 = vmax.f32 %v1345_v15, 0.0  ;;  %v1400_v15 = vpack.c.bf16 %v1384_v12, %v1382_v11 }
  0xe2   : > { %v1396_v22 = vpack.c.bf16 %v1376_v18, %v1374_v16  ;;  %v1401_v16 = vpack.c.bf16 %v1385_v14, %v1383_v13  ;;  %v2758_v18 = vor.u32 %v2929_v8, %v2757_v49  ;;  %v3711_v13 = vperm.slane %v1438_v62, 0 }
  0xe3   : > { %v1397_v24 = vpack.c.bf16 %v1377_v21, %v1375_v20  ;;  %v1321_v7 = vpop.f32.mrf.mxu2  ;;  %v2759_v20 = vld [vmem:[#allocation12 + $0x28] sm:$0xf0]  ;;  %v1315_v21 = vadd.f32 %v3655_v23, %v3631_v27  ;;  %v1320_v23 = vadd.f32 %v1319_v55, %v3631_v27  ;;  %v880_v55 = vsel %vm834_vm2, %v874_v53, %v3211_v1 }
  0xe4   : > { %1622 = vmatmul.bf16.gmra.mxu2 %v1396_v22  ;;  %1708 = vmatmul.bf16.gmra.mxu0 %v1396_v22  ;;  %v1364_v10 = vpop.f32.mrf.mxu3  ;;  %v2762_v9 = vor.u32 %v2928_v52, %v2759_v20  ;;  %v1317_v22 = vadd.f32 %v1316_v37, %v3631_v27  ;;  %v1391_v37 = vmax.f32 %v1363_v35, 0.0  ;;  %v882_v57 = vpack.c.bf16 0.0, %v880_v55  ;;  %v2514_v7 = vld [vmem:[%s3471_s20 + $0x10] sm:$0xff]  }
  0xe5   : > { %1665 = vmatmul.bf16.gmra.mxu3 %v1397_v24  ;;  %1751 = vmatmul.bf16.gmra.mxu1 %v1397_v24  ;;  %v1304_v26 = vpop.f32.mrf.mxu0  ;;  %v1358_v24 = vadd.f32 %v3657_v25, %v3633_v28  ;;  %v1386_v29 = vmax.f32 %v1315_v21, 0.0  ;;  %v920_v10 = vunpack.c.l.bf16 %v2514_v7  ;;  %v943_v11 = vunpack.c.h.bf16 %v2514_v7 }
  0xe6   : > { %v1347_v32 = vpop.f32.mrf.mxu1  ;;  %v1305_v36 = vadd.f32 %v1304_v26, %v3631_v27  ;;  %2007 = vmatpush.bf16.msra.mxu2 %v2758_v18  ;;  %2050 = vmatpush.bf16.msra.mxu3 %v2762_v9  ;;  %v1360_v26 = vadd.f32 %v1359_v40, %v3633_v28  ;;  %v1388_v30 = vmax.f32 %v1317_v22, 0.0  ;;  %885 = vst [vmem:[#allocation17 + $0x8] sm:$0xf] %v882_v57 }
  0xe7   : > { %v1348_v38 = vadd.f32 %v1347_v32, %v3633_v28  ;;  %v1387_v31 = vmax.f32 %v1358_v24, 0.0  ;;  %v926_v14 = vsel %vm834_vm2, %v920_v10, %v3211_v1 }
  0xe8   : > { %v1378_v44 = vmax.f32 %v1305_v36, 0.0  ;;  %v1389_v32 = vmax.f32 %v1360_v26, 0.0  ;;  %v1402_v33 = vpack.c.bf16 %v1388_v30, %v1386_v29  ;;  %v1390_v36 = vmax.f32 %v1320_v23, 0.0 }
  0xe9   : > { %v1379_v46 = vmax.f32 %v1348_v38, 0.0  ;;  %v1405_v38 = vpack.c.bf16 %v1391_v37, %v1391_v37  ;;  %v928_v49 = vpack.c.bf16 0.0, %v926_v14 }
  0xea   : > { %v1403_v34 = vpack.c.bf16 %v1389_v32, %v1387_v31  ;;  %v1404_v25 = vpack.c.bf16 %v1390_v36, %v1390_v36 }
  0xeb   : > { %931 = vst [vmem:[#allocation17 + $0x10] sm:$0xf] %v928_v49 }
  0xed   : > { %v1306_v39 = vpop.f32.mrf.mxu0 }
  0xee   : > { %v1307_v41 = vadd.f32 %v1306_v39, %v3631_v27  ;;  %v1349_v42 = vpop.f32.mrf.mxu1  ;;  %v828_v39 = vld [vmem:[%s3471_s20] sm:$0xff]  }
  0xef   : > { %v1350_v43 = vadd.f32 %v1349_v42, %v3633_v28  ;;  %v829_v40 = vunpack.c.l.bf16 %v828_v39 }
  0xf0   : > { %v1380_v45 = vmax.f32 %v1307_v41, 0.0  ;;  %v851_v41 = vunpack.c.h.bf16 %v828_v39 }
  0xf1   : > { %v1381_v47 = vmax.f32 %v1350_v43, 0.0  ;;  %v835_v27 = vsel %vm834_vm2, %v829_v40, %v3211_v1 }
  0xf2   : > { %v1398_v48 = vpack.c.bf16 %v1380_v45, %v1378_v44  ;;  %v857_v28 = vsel %vm834_vm2, %v851_v41, %v3211_v1  ;;  %v836_v42 = vpack.c.bf16 0.0, %v835_v27  ;;  %v2749_v44 = vld [vmem:[#allocation12 + $0x10] sm:$0xf]  ;;  %v2927_v45 = vld [vmem:[#allocation12 + $0x14] sm:$0xf0] }
  0xf3   : > { %v1399_v50 = vpack.c.bf16 %v1381_v47, %v1379_v46  ;;  %v859_v43 = vpack.c.bf16 0.0, %v857_v28  ;;  %v2926_v46 = vld [vmem:[#allocation12 + $0x14] sm:$0xf]  ;;  %v2750_v47 = vor.u32 %v2927_v45, %v2749_v44 }
  0xf4   : > { %1627 = vmatmul.bf16.gmra.mxu2 %v1398_v48  ;;  %1713 = vmatmul.bf16.gmra.mxu0 %v1398_v48  ;;  %839 = vst [vmem:[#allocation17] sm:$0xf] %v836_v42  ;;  %v2751_v48 = vld [vmem:[#allocation12 + $0x18] sm:$0xf0] }
  0xf5   : > { %1670 = vmatmul.bf16.gmra.mxu3 %v1399_v50  ;;  %1756 = vmatmul.bf16.gmra.mxu1 %v1399_v50  ;;  %862 = vst [vmem:[#allocation17 + $0x4] sm:$0xf] %v859_v43  ;;  %v2754_v50 = vor.u32 %v2926_v46, %v2751_v48 }
  0xf6   : > { %2008 = vmatpush.bf16.msra.mxu2 %v2750_v47 }
  0xf7   : > { %2051 = vmatpush.bf16.msra.mxu3 %v2754_v50 }
  0xfa   : > { %2009 = vmatpush.bf16.msra.mxu2 %v2742_v63 }
  0xfb   : > { %2052 = vmatpush.bf16.msra.mxu3 %v2746_v2 }
  0xfc   : > { %v2957_v32 = vld [vmem:[#allocation17] sm:$0xff]  }
  0xfd   : > { %v2958_v39 = vunpack.c.l.bf16 %v2957_v32  ;;  %v2959_v42 = vunpack.c.h.bf16 %v2957_v32 }
 0x104   : > { %1632 = vmatmul.bf16.gmra.mxu2 %v1400_v15  ;;  %1718 = vmatmul.bf16.gmra.mxu0 %v1400_v15  ;;  %v949_v15 = vsel %vm834_vm2, %v943_v11, %v3211_v1 }
 0x105   : > { %1675 = vmatmul.bf16.gmra.mxu3 %v1401_v16  ;;  %1761 = vmatmul.bf16.gmra.mxu1 %v1401_v16  ;;  %v951_v8 = vpack.c.bf16 0.0, %v949_v15 }
 0x107   : > { %954 = vst [vmem:[#allocation17 + $0x14] sm:$0xf] %v951_v8 }
 0x114   : > { %1637 = vmatmul.bf16.gmra.mxu2 %v1402_v33  ;;  %1723 = vmatmul.bf16.gmra.mxu0 %v1402_v33 }
 0x115   : > { %1680 = vmatmul.bf16.gmra.mxu3 %v1403_v34  ;;  %1766 = vmatmul.bf16.gmra.mxu1 %v1403_v34 }
 0x124   : > { %1642 = vmatmul.bf16.gmra.mxu2 %v1404_v25  ;;  %1728 = vmatmul.bf16.gmra.mxu0 %v1404_v25 }
 0x125   : > { %1685 = vmatmul.bf16.gmra.mxu3 %v1405_v38  ;;  %1771 = vmatmul.bf16.gmra.mxu1 %v1405_v38  ;;  %v2516_v38 = vld [vmem:[%s3471_s20 + $0x18] sm:$0xff]  }
 0x126   : > { %v966_v40 = vunpack.c.l.bf16 %v2516_v38  ;;  %v989_v41 = vunpack.c.h.bf16 %v2516_v38 }
 0x128   : > { %v972_v43 = vsel %vm834_vm2, %v966_v40, %v3211_v1  ;;  %v995_v44 = vsel %vm834_vm2, %v989_v41, %v3211_v1  ;;  %v2947_v41 = vld [vmem:[#allocation14 + $0x38] sm:$0xff] }
 0x129   : > { %v974_v46 = vpack.c.bf16 0.0, %v972_v43  ;;  %v997_v47 = vpack.c.bf16 0.0, %v995_v44  ;;  %2260 = vmatpush.bf16.msra.mxu0 %v2947_v41 }
 0x12b   : > { %977 = vst [vmem:[#allocation17 + $0x18] sm:$0xf] %v974_v46 }
 0x12c   : > { %1000 = vst [vmem:[#allocation17 + $0x1c] sm:$0xf] %v997_v47 }
 0x141   : > { %v1699_v4 = vpop.f32.mrf.mxu0 }
 0x142   : > { %v1700_v5 = vadd.f32 %v1699_v4, %v3701_v3  ;;  %v1742_v6 = vpop.f32.mrf.mxu1 }
 0x144   : > { %v1743_v12 = vadd.f32 %v1742_v6, %v1700_v5  ;;  %v2980_v5 = vld [vmem:[#allocation17 + $0x8] sm:$0xff]  }
 0x145   : > { %v2962_v49 = vunpack.c.l.bf16 %v2980_v5 }
 0x146   : > { %1777 = vst [vmem:[%s3709_s19 + $0x8] sm:$0xff] %v1743_v12  ;;  %v1802_v16 = vmul.f32 0.5, %v1743_v12 }
 0x147   : > { %v1613_v52 = vpop.f32.mrf.mxu2 }
 0x148   : > { %v1614_v18 = vadd.f32 %v1613_v52, %v3711_v13  ;;  %v1656_v20 = vpop.f32.mrf.mxu3  ;;  %v1815_v21 = vmul.f32 1.442695, %v1802_v16  ;;  %v2518_v16 = vld [vmem:[%s3471_s20 + $0x20] sm:$0xff]  }
 0x149   : > { %v1701_v9 = vpop.f32.mrf.mxu0  ;;  %v1012_v8 = vunpack.c.l.bf16 %v2518_v16  ;;  %v1035_v52 = vunpack.c.h.bf16 %v2518_v16 }
 0x14a   : > { %v1657_v22 = vadd.f32 %v1656_v20, %v1614_v18  ;;  %v1702_v24 = vadd.f32 %v1701_v9, %v3701_v3  ;;  %v1744_v26 = vpop.f32.mrf.mxu1  ;;  %3035 = vpow2.f32 %v1815_v21  ;;  %v2963_v9 = vunpack.c.h.bf16 %v2980_v5 }
 0x14b   : > { %v1018_v21 = vsel %vm834_vm2, %v1012_v8, %v3211_v1 }
 0x14c   : > { %1776 = vst [vmem:[%s3709_s19] sm:$0xff] %v1657_v22  ;;  %v1745_v29 = vadd.f32 %v1744_v26, %v1702_v24  ;;  %v1020_v26 = vpack.c.bf16 0.0, %v1018_v21 }
 0x14e   : > { %1779 = vst [vmem:[%s3709_s19 + $0x18] sm:$0xff] %v1745_v29  ;;  %v1803_v30 = vmul.f32 0.5, %v1745_v29 }
 0x14f   : > { %v1615_v31 = vpop.f32.mrf.mxu2  ;;  %1023 = vst [vmem:[#allocation17 + $0x20] sm:$0xf] %v1020_v26 }
 0x150   : > { %v1817_v33 = vmul.f32 1.442695, %v1803_v30  ;;  %v1616_v34 = vadd.f32 %v1615_v31, %v3711_v13  ;;  %v1658_v23 = vpop.f32.mrf.mxu3  ;;  %v3036_v27 = vpop.eup %3035 }
 0x151   : > { %v1704_v35 = vpop.f32.mrf.mxu0  ;;  %v1867_v48 = vmul.f32 %v3036_v27, %v2958_v39  ;;  %v2955_v27 = vld [vmem:[#allocation14 + $0x78] sm:$0xff] }
 0x152   : > { %3037 = vpow2.f32 %v1817_v33  ;;  %v1659_v36 = vadd.f32 %v1658_v23, %v1616_v34  ;;  %v1705_v37 = vadd.f32 %v1704_v35, %v3701_v3  ;;  %v1747_v25 = vpop.f32.mrf.mxu1  ;;  %2303 = vmatpush.bf16.msra.mxu1 %v2955_v27 }
 0x153   : > { %v1880_v61 = vadd.f32 %v1867_v48, %v1657_v22  ;;  %v1041_v22 = vsel %vm834_vm2, %v1035_v52, %v3211_v1 }
 0x154   : > { %1778 = vst [vmem:[%s3709_s19 + $0x10] sm:$0xff] %v1659_v36  ;;  %v1748_v28 = vadd.f32 %v1747_v25, %v1705_v37  ;;  %v1043_v29 = vpack.c.bf16 0.0, %v1041_v22 }
 0x156   : > { %1781 = vst [vmem:[%s3709_s19 + $0x28] sm:$0xff] %v1748_v28  ;;  %v1804_v45 = vmul.f32 0.5, %v1748_v28 }
 0x157   : > { %v1618_v50 = vpop.f32.mrf.mxu2  ;;  %1046 = vst [vmem:[#allocation17 + $0x24] sm:$0xf] %v1043_v29  ;;  %v2982_v29 = vld [vmem:[#allocation17 + $0x18] sm:$0xff]  }
 0x158   : > { %v3038_v51 = vpop.eup %3037  ;;  %v1619_v53 = vadd.f32 %v1618_v50, %v3711_v13  ;;  %v1661_v54 = vpop.f32.mrf.mxu3  ;;  %v1819_v57 = vmul.f32 1.442695, %v1804_v45  ;;  %v2981_v45 = vld [vmem:[#allocation17 + $0x10] sm:$0xff]  }
 0x159   : > { %v1868_v55 = vmul.f32 %v3038_v51, %v2959_v42  ;;  %v1706_v56 = vpop.f32.mrf.mxu0 }
 0x15a   : > { %v1662_v58 = vadd.f32 %v1661_v54, %v1619_v53  ;;  %v1707_v59 = vadd.f32 %v1706_v56, %v3701_v3  ;;  %v1749_v60 = vpop.f32.mrf.mxu1  ;;  %3039 = vpow2.f32 %v1819_v57  ;;  %v2966_v56 = vunpack.c.l.bf16 %v2981_v45 }
 0x15b   : > { %v1881_v62 = vadd.f32 %v1868_v55, %v1659_v36  ;;  %v2520_v55 = vld [vmem:[%s3471_s20 + $0x28] sm:$0xff]  }
 0x15c   : > { %1780 = vst [vmem:[%s3709_s19 + $0x20] sm:$0xff] %v1662_v58  ;;  %v1750_v63 = vadd.f32 %v1749_v60, %v1707_v59  ;;  %v1058_v57 = vunpack.c.l.bf16 %v2520_v55 }
 0x15d   : > { %v1893_v0 = vpack.c.bf16 %v1881_v62, %v1880_v61  ;;  %v2967_v61 = vunpack.c.h.bf16 %v2981_v45 }
 0x15e   : > { %1783 = vst [vmem:[%s3709_s19 + $0x38] sm:$0xff] %v1750_v63  ;;  %v1805_v2 = vmul.f32 0.5, %v1750_v63  ;;  %v1064_v62 = vsel %vm834_vm2, %v1058_v57, %v3211_v1  ;;  %v2952_v57 = vld [vmem:[#allocation14 + $0x60] sm:$0xff] }
 0x15f   : > { %v1620_v4 = vpop.f32.mrf.mxu2  ;;  %2010 = vmatmul.bf16.vlgmr.msra.gmra.mxu2 %v1893_v0  ;;  %2053 = vmatmul.bf16.vlgmr.msra.gmra.mxu3 %v1893_v0 }
 0x160   : > { %v1821_v6 = vmul.f32 1.442695, %v1805_v2  ;;  %v1621_v7 = vadd.f32 %v1620_v4, %v3711_v13  ;;  %v1663_v10 = vpop.f32.mrf.mxu3  ;;  %v3040_v18 = vpop.eup %3039  ;;  %v1066_v2 = vpack.c.bf16 0.0, %v1064_v62 }
 0x161   : > { %v1709_v11 = vpop.f32.mrf.mxu0  ;;  %v1869_v30 = vmul.f32 %v3040_v18, %v2962_v49 }
 0x162   : > { %3041 = vpow2.f32 %v1821_v6  ;;  %v1664_v12 = vadd.f32 %v1663_v10, %v1621_v7  ;;  %v1710_v14 = vadd.f32 %v1709_v11, %v3701_v3  ;;  %v1752_v15 = vpop.f32.mrf.mxu1  ;;  %1069 = vst [vmem:[#allocation17 + $0x28] sm:$0xf] %v1066_v2 }
 0x163   : > { %v1882_v39 = vadd.f32 %v1869_v30, %v1662_v58  ;;  %v1081_v58 = vunpack.c.h.bf16 %v2520_v55 }
 0x164   : > { %1782 = vst [vmem:[%s3709_s19 + $0x30] sm:$0xff] %v1664_v12  ;;  %v1753_v20 = vadd.f32 %v1752_v15, %v1710_v14 }
 0x165   : > { %v1087_v63 = vsel %vm834_vm2, %v1081_v58, %v3211_v1 }
 0x166   : > { %1785 = vst [vmem:[%s3709_s19 + $0x48] sm:$0xff] %v1753_v20  ;;  %v1806_v24 = vmul.f32 0.5, %v1753_v20  ;;  %v1089_v4 = vpack.c.bf16 0.0, %v1087_v63  ;;  %v2946_v20 = vld [vmem:[#allocation14 + $0x30] sm:$0xff] }
 0x167   : > { %v1623_v31 = vpop.f32.mrf.mxu2  ;;  %2261 = vmatpush.bf16.msra.mxu0 %v2946_v20  ;;  %v2983_v63 = vld [vmem:[#allocation17 + $0x20] sm:$0xff]  }
 0x168   : > { %v3042_v32 = vpop.eup %3041  ;;  %v1624_v33 = vadd.f32 %v1623_v31, %v3711_v13  ;;  %v1666_v34 = vpop.f32.mrf.mxu3  ;;  %v1823_v36 = vmul.f32 1.442695, %v1806_v24  ;;  %1092 = vst [vmem:[#allocation17 + $0x2c] sm:$0xf] %v1089_v4 }
 0x169   : > { %v1711_v23 = vpop.f32.mrf.mxu0  ;;  %v1870_v35 = vmul.f32 %v3042_v32, %v2963_v9  ;;  %v2954_v9 = vld [vmem:[#allocation14 + $0x70] sm:$0xff] }
 0x16a   : > { %v1667_v37 = vadd.f32 %v1666_v34, %v1624_v33  ;;  %v1712_v25 = vadd.f32 %v1711_v23, %v3701_v3  ;;  %v1754_v38 = vpop.f32.mrf.mxu1  ;;  %3043 = vpow2.f32 %v1823_v36  ;;  %2304 = vmatpush.bf16.msra.mxu1 %v2954_v9  ;;  %v2970_v36 = vunpack.c.l.bf16 %v2982_v29 }
 0x16b   : > { %v1883_v40 = vadd.f32 %v1870_v35, %v1664_v12 }
 0x16c   : > { %1784 = vst [vmem:[%s3709_s19 + $0x40] sm:$0xff] %v1667_v37  ;;  %v1755_v28 = vadd.f32 %v1754_v38, %v1712_v25  ;;  %v2953_v25 = vld [vmem:[#allocation14 + $0x68] sm:$0xff] }
 0x16d   : > { %v1894_v42 = vpack.c.bf16 %v1883_v40, %v1882_v39  ;;  %v2971_v40 = vunpack.c.h.bf16 %v2982_v29 }
 0x16e   : > { %1787 = vst [vmem:[%s3709_s19 + $0x58] sm:$0xff] %v1755_v28  ;;  %v1807_v43 = vmul.f32 0.5, %v1755_v28  ;;  %2305 = vmatpush.bf16.msra.mxu1 %v2953_v25 }
 0x16f   : > { %v1625_v44 = vpop.f32.mrf.mxu2  ;;  %2015 = vmatmul.bf16.gmra.mxu2 %v1894_v42  ;;  %2058 = vmatmul.bf16.gmra.mxu3 %v1894_v42 }
 0x170   : > { %v1825_v46 = vmul.f32 1.442695, %v1807_v43  ;;  %v1626_v47 = vadd.f32 %v1625_v44, %v3711_v13  ;;  %v1668_v48 = vpop.f32.mrf.mxu3  ;;  %v3044_v59 = vpop.eup %3043 }
 0x171   : > { %v1714_v50 = vpop.f32.mrf.mxu0  ;;  %v1871_v5 = vmul.f32 %v3044_v59, %v2966_v56  ;;  %v2944_v56 = vld [vmem:[#allocation14 + $0x20] sm:$0xff] }
 0x172   : > { %3045 = vpow2.f32 %v1825_v46  ;;  %v1669_v51 = vadd.f32 %v1668_v48, %v1626_v47  ;;  %v1715_v53 = vadd.f32 %v1714_v50, %v3701_v3  ;;  %v1757_v54 = vpop.f32.mrf.mxu1  ;;  %2306 = vmatpush.bf16.msra.mxu1 %v2952_v57 }
 0x173   : > { %v1884_v52 = vadd.f32 %v1871_v5, %v1667_v37  ;;  %v2945_v37 = vld [vmem:[#allocation14 + $0x28] sm:$0xff] }
 0x174   : > { %1786 = vst [vmem:[%s3709_s19 + $0x50] sm:$0xff] %v1669_v51  ;;  %v1758_v60 = vadd.f32 %v1757_v54, %v1715_v53  ;;  %2262 = vmatpush.bf16.msra.mxu0 %v2945_v37  ;;  %v1119_v53 = vsel %vm834_vm2, %v3509_v17, %v3211_v1  ;;  %v2984_v37 = vld [vmem:[#allocation17 + $0x28] sm:$0xff]  }
 0x176   : > { %1789 = vst [vmem:[%s3709_s19 + $0x68] sm:$0xff] %v1758_v60  ;;  %v1808_v0 = vmul.f32 0.5, %v1758_v60 }
 0x177   : > { %v1628_v6 = vpop.f32.mrf.mxu2 }
 0x178   : > { %v3046_v7 = vpop.eup %3045  ;;  %v1629_v10 = vadd.f32 %v1628_v6, %v3711_v13  ;;  %v1671_v11 = vpop.f32.mrf.mxu3  ;;  %v1827_v15 = vmul.f32 1.442695, %v1808_v0  ;;  %2263 = vmatpush.bf16.msra.mxu0 %v2944_v56 }
 0x179   : > { %v1872_v12 = vmul.f32 %v3046_v7, %v2967_v61  ;;  %v1716_v14 = vpop.f32.mrf.mxu0  ;;  %v1121_v61 = vpack.c.bf16 0.0, %v1119_v53  ;;  %v2974_v7 = vunpack.c.l.bf16 %v2983_v63 }
 0x17a   : > { %v1672_v16 = vadd.f32 %v1671_v11, %v1629_v10  ;;  %v1717_v49 = vadd.f32 %v1716_v14, %v3701_v3  ;;  %v1759_v8 = vpop.f32.mrf.mxu1  ;;  %3047 = vpow2.f32 %v1827_v15  ;;  %v2943_v14 = vld [vmem:[#allocation14 + $0x18] sm:$0xff] }
 0x17b   : > { %v1885_v18 = vadd.f32 %v1872_v12, %v1669_v51  ;;  %1124 = vst [vmem:[#allocation17 + $0x30] sm:$0xf] %v1121_v61  ;;  %v2975_v12 = vunpack.c.h.bf16 %v2983_v63  ;;  %v2951_v15 = vld [vmem:[#allocation14 + $0x58] sm:$0xff] }
 0x17c   : > { %1788 = vst [vmem:[%s3709_s19 + $0x60] sm:$0xff] %v1672_v16  ;;  %v1760_v21 = vadd.f32 %v1759_v8, %v1717_v49  ;;  %2264 = vmatpush.bf16.msra.mxu0 %v2943_v14  ;;  %2307 = vmatpush.bf16.msra.mxu1 %v2951_v15 }
 0x17d   : > { %v1895_v22 = vpack.c.bf16 %v1885_v18, %v1884_v52 }
 0x17e   : > { %1791 = vst [vmem:[%s3709_s19 + $0x78] sm:$0xff] %v1760_v21  ;;  %v1809_v24 = vmul.f32 0.5, %v1760_v21 }
 0x17f   : > { %v1630_v26 = vpop.f32.mrf.mxu2  ;;  %2020 = vmatmul.bf16.gmra.mxu2 %v1895_v22  ;;  %2063 = vmatmul.bf16.gmra.mxu3 %v1895_v22 }
 0x180   : > { %v1829_v30 = vmul.f32 1.442695, %v1809_v24  ;;  %v1631_v31 = vadd.f32 %v1630_v26, %v3711_v13  ;;  %v1673_v32 = vpop.f32.mrf.mxu3  ;;  %v3048_v38 = vpop.eup %3047 }
 0x181   : > { %v1719_v33 = vpop.f32.mrf.mxu0  ;;  %v1873_v27 = vmul.f32 %v3048_v38, %v2970_v36  ;;  %v2950_v36 = vld [vmem:[#allocation14 + $0x50] sm:$0xff] }
 0x182   : > { %3049 = vpow2.f32 %v1829_v30  ;;  %v1674_v34 = vadd.f32 %v1673_v32, %v1631_v31  ;;  %v1720_v23 = vadd.f32 %v1719_v33, %v3701_v3  ;;  %v1762_v35 = vpop.f32.mrf.mxu1  ;;  %2308 = vmatpush.bf16.msra.mxu1 %v2950_v36 }
 0x183   : > { %v1886_v54 = vadd.f32 %v1873_v27, %v1672_v16  ;;  %v2949_v27 = vld [vmem:[#allocation14 + $0x48] sm:$0xff] }
 0x184   : > { %1790 = vst [vmem:[%s3709_s19 + $0x70] sm:$0xff] %v1674_v34  ;;  %v1763_v39 = vadd.f32 %v1762_v35, %v1720_v23  ;;  %v2942_v35 = vld [vmem:[#allocation14 + $0x10] sm:$0xff] }
 0x185   : > { %2265 = vmatpush.bf16.msra.mxu0 %v2942_v35 }
 0x186   : > { %1793 = vst [vmem:[%s3709_s19 + $0x88] sm:$0xff] %v1763_v39  ;;  %v1810_v41 = vmul.f32 0.5, %v1763_v39  ;;  %2309 = vmatpush.bf16.msra.mxu1 %v2949_v27 }
 0x187   : > { %v1633_v28 = vpop.f32.mrf.mxu2 }
 0x188   : > { %v3050_v42 = vpop.eup %3049  ;;  %v1634_v43 = vadd.f32 %v1633_v28, %v3711_v13  ;;  %v1676_v44 = vpop.f32.mrf.mxu3  ;;  %v1831_v47 = vmul.f32 1.442695, %v1810_v41  ;;  %v2941_v41 = vld [vmem:[#allocation14 + $0x8] sm:$0xff] }
 0x189   : > { %v1874_v45 = vmul.f32 %v3050_v42, %v2971_v40  ;;  %v1721_v46 = vpop.f32.mrf.mxu0  ;;  %2266 = vmatpush.bf16.msra.mxu0 %v2941_v41 }
 0x18a   : > { %v1677_v48 = vadd.f32 %v1676_v44, %v1634_v43  ;;  %v1722_v50 = vadd.f32 %v1721_v46, %v3701_v3  ;;  %v1764_v51 = vpop.f32.mrf.mxu1  ;;  %3051 = vpow2.f32 %v1831_v47  ;;  %v2978_v44 = vunpack.c.l.bf16 %v2984_v37 }
 0x18b   : > { %v1887_v55 = vadd.f32 %v1874_v45, %v1674_v34  ;;  %v2979_v47 = vunpack.c.h.bf16 %v2984_v37 }
 0x18c   : > { %1792 = vst [vmem:[%s3709_s19 + $0x80] sm:$0xff] %v1677_v48  ;;  %v1765_v58 = vadd.f32 %v1764_v51, %v1722_v50 }
 0x18d   : > { %v1896_v59 = vpack.c.bf16 %v1887_v55, %v1886_v54 }
 0x18e   : > { %1795 = vst [vmem:[%s3709_s19 + $0x98] sm:$0xff] %v1765_v58  ;;  %v1811_v60 = vmul.f32 0.5, %v1765_v58 }
 0x18f   : > { %v1635_v62 = vpop.f32.mrf.mxu2  ;;  %2025 = vmatmul.bf16.gmra.mxu2 %v1896_v59  ;;  %2068 = vmatmul.bf16.gmra.mxu3 %v1896_v59 }
 0x190   : > { %v1833_v19 = vmul.f32 1.442695, %v1811_v60  ;;  %v1636_v17 = vadd.f32 %v1635_v62, %v3711_v13  ;;  %v1678_v0 = vpop.f32.mrf.mxu3  ;;  %v3052_v10 = vpop.eup %3051  ;;  %v1853_v62 = vld [vmem:[#allocation17 + $0x30] sm:$0xf] }
 0x191   : > { %v1724_v2 = vpop.f32.mrf.mxu0  ;;  %v1875_v49 = vmul.f32 %v3052_v10, %v2974_v7  ;;  %v2948_v7 = vld [vmem:[#allocation14 + $0x40] sm:$0xff] }
 0x192   : > { %3053 = vpow2.f32 %v1833_v19  ;;  %v1679_v4 = vadd.f32 %v1678_v0, %v1636_v17  ;;  %v1725_v5 = vadd.f32 %v1724_v2, %v3701_v3  ;;  %v1767_v6 = vpop.f32.mrf.mxu1  ;;  %v1866_v19 = vunpack.c.l.bf16 %v1853_v62  ;;  %2310 = vmatpush.bf16.msra.mxu1 %v2948_v7  ;;  %v1916_v10 = vld [vmem:[%s3873_s5] sm:$0x3] }
 0x193   : > { %v1888_v30 = vadd.f32 %v1875_v49, %v1677_v48  ;;  %v3798_v14 = vperm.slane %v1916_v10, 0  ;;  %v3800_v15 = vperm.slane %v1916_v10, 1 }
 0x194   : > { %1794 = vst [vmem:[%s3709_s19 + $0x90] sm:$0xff] %v1679_v4  ;;  %v1768_v11 = vadd.f32 %v1767_v6, %v1725_v5  ;;  %v2940_v6 = vld [vmem:[#allocation14] sm:$0xff] }
 0x195   : > { %2267 = vmatpush.bf16.msra.mxu0 %v2940_v6 }
 0x196   : > { %1797 = vst [vmem:[%s3709_s19 + $0xa8] sm:$0xff] %v1768_v11  ;;  %v1812_v16 = vmul.f32 0.5, %v1768_v11 }
 0x197   : > { %v1638_v8 = vpop.f32.mrf.mxu2 }
 0x198   : > { %v3054_v52 = vpop.eup %3053  ;;  %v1639_v18 = vadd.f32 %v1638_v8, %v3711_v13  ;;  %v1681_v20 = vpop.f32.mrf.mxu3  ;;  %v1835_v22 = vmul.f32 1.442695, %v1812_v16 }
 0x199   : > { %v1876_v9 = vmul.f32 %v3054_v52, %v2975_v12  ;;  %v1726_v21 = vpop.f32.mrf.mxu0 }
 0x19a   : > { %v1682_v24 = vadd.f32 %v1681_v20, %v1639_v18  ;;  %v1727_v26 = vadd.f32 %v1726_v21, %v3701_v3  ;;  %v1769_v29 = vpop.f32.mrf.mxu1  ;;  %3055 = vpow2.f32 %v1835_v22 }
 0x19b   : > { %v1889_v31 = vadd.f32 %v1876_v9, %v1679_v4 }
 0x19c   : > { %1796 = vst [vmem:[%s3709_s19 + $0xa0] sm:$0xff] %v1682_v24  ;;  %v1770_v32 = vadd.f32 %v1769_v29, %v1727_v26 }
 0x19d   : > { %v1897_v33 = vpack.c.bf16 %v1889_v31, %v1888_v30 }
 0x19e   : > { %1799 = vst [vmem:[%s3709_s19 + $0xb8] sm:$0xff] %v1770_v32  ;;  %v1813_v34 = vmul.f32 0.5, %v1770_v32 }
 0x19f   : > { %v1640_v23 = vpop.f32.mrf.mxu2  ;;  %2030 = vmatmul.bf16.gmra.mxu2 %v1897_v33  ;;  %2073 = vmatmul.bf16.gmra.mxu3 %v1897_v33 }
 0x1a0   : > { %v1837_v25 = vmul.f32 1.442695, %v1813_v34  ;;  %v1641_v38 = vadd.f32 %v1640_v23, %v3711_v13  ;;  %v1683_v39 = vpop.f32.mrf.mxu3  ;;  %v3056_v45 = vpop.eup %3055 }
 0x1a1   : > { %v1729_v40 = vpop.f32.mrf.mxu0  ;;  %v1877_v50 = vmul.f32 %v3056_v45, %v2978_v44 }
 0x1a2   : > { %3057 = vpow2.f32 %v1837_v25  ;;  %v1684_v28 = vadd.f32 %v1683_v39, %v1641_v38  ;;  %v1730_v42 = vadd.f32 %v1729_v40, %v3701_v3  ;;  %v1772_v43 = vpop.f32.mrf.mxu1 }
 0x1a3   : > { %v1890_v60 = vadd.f32 %v1877_v50, %v1682_v24 }
 0x1a4   : > { %1798 = vst [vmem:[%s3709_s19 + $0xb0] sm:$0xff] %v1684_v28  ;;  %v1773_v46 = vadd.f32 %v1772_v43, %v1730_v42 }
 0x1a6   : > { %1801 = vst [vmem:[%s3709_s19 + $0xc8] sm:$0xff] %v1773_v46  ;;  %v1814_v48 = vmul.f32 0.5, %v1773_v46 }
 0x1a7   : > { %v1643_v51 = vpop.f32.mrf.mxu2 }
 0x1a8   : > { %v3058_v53 = vpop.eup %3057  ;;  %v1839_v54 = vmul.f32 1.442695, %v1814_v48  ;;  %v1644_v55 = vadd.f32 %v1643_v51, %v3711_v13  ;;  %v1686_v56 = vpop.f32.mrf.mxu3 }
 0x1a9   : > { %v1878_v57 = vmul.f32 %v3058_v53, %v2979_v47  ;;  %v1731_v3 = vpop.f32.mrf.mxu0 }
 0x1aa   : > { %3059 = vpow2.f32 %v1839_v54  ;;  %v1687_v58 = vadd.f32 %v1686_v56, %v1644_v55  ;;  %v1774_v59 = vpop.f32.mrf.mxu1 }
 0x1ab   : > { %v1891_v61 = vadd.f32 %v1878_v57, %v1684_v28 }
 0x1ac   : > { %1800 = vst [vmem:[%s3709_s19 + $0xc0] sm:$0xff] %v1687_v58 }
 0x1ad   : > { %v1898_v63 = vpack.c.bf16 %v1891_v61, %v1890_v60 }
 0x1af   : > { %2035 = vmatmul.bf16.gmra.mxu2 %v1898_v63  ;;  %2078 = vmatmul.bf16.gmra.mxu3 %v1898_v63  ;;  %v1645_v17 = vpop.f32.mrf.mxu2 }
 0x1b0   : > { %v3060_v0 = vpop.eup %3059  ;;  %v1688_v2 = vpop.f32.mrf.mxu3 }
 0x1b1   : > { %v1879_v4 = vmul.f32 %v3060_v0, %v1866_v19 }
 0x1b3   : > { %v1892_v5 = vadd.f32 %v1879_v4, %v1687_v58 }
 0x1b5   : > { %v1899_v13 = vpack.c.bf16 %v1892_v5, %v1892_v5 }
 0x1bf   : > { %2040 = vmatmul.bf16.gmra.mxu2 %v1899_v13  ;;  %2083 = vmatmul.bf16.gmra.mxu3 %v1899_v13 }
 0x1e2   : > { %v2011_v11 = vpop.f32.mrf.mxu2  ;;  %v2054_v12 = vpop.f32.mrf.mxu3 }
 0x1e3   : > { %v2012_v16 = vadd.f32 %v2011_v11, %v3798_v14  ;;  %v2055_v49 = vadd.f32 %v2054_v12, %v3800_v15 }
 0x1e5   : > { %v2088_v9 = vmax.f32 %v2012_v16, 0.0  ;;  %v2089_v21 = vmax.f32 %v2055_v49, 0.0 }
 0x1ea   : > { %v2013_v8 = vpop.f32.mrf.mxu2  ;;  %v2056_v52 = vpop.f32.mrf.mxu3 }
 0x1eb   : > { %v2014_v18 = vadd.f32 %v2013_v8, %v3798_v14  ;;  %v2057_v20 = vadd.f32 %v2056_v52, %v3800_v15 }
 0x1ed   : > { %v2090_v22 = vmax.f32 %v2014_v18, 0.0  ;;  %v2091_v24 = vmax.f32 %v2057_v20, 0.0 }
 0x1ef   : > { %v2114_v26 = vpack.c.bf16 %v2090_v22, %v2088_v9  ;;  %v2115_v29 = vpack.c.bf16 %v2091_v24, %v2089_v21 }
 0x1f1   : > { %2268 = vmatmul.bf16.vlgmr.msra.gmra.mxu0 %v2114_v26  ;;  %2311 = vmatmul.bf16.vlgmr.msra.gmra.mxu1 %v2115_v29 }
 0x1f2   : > { %v2016_v30 = vpop.f32.mrf.mxu2  ;;  %v2059_v31 = vpop.f32.mrf.mxu3 }
 0x1f3   : > { %v2017_v32 = vadd.f32 %v2016_v30, %v3798_v14  ;;  %v2060_v33 = vadd.f32 %v2059_v31, %v3800_v15 }
 0x1f5   : > { %v2092_v37 = vmax.f32 %v2017_v32, 0.0  ;;  %v2093_v25 = vmax.f32 %v2060_v33, 0.0 }
 0x1fa   : > { %v2018_v34 = vpop.f32.mrf.mxu2  ;;  %v2061_v23 = vpop.f32.mrf.mxu3 }
 0x1fb   : > { %v2019_v35 = vadd.f32 %v2018_v34, %v3798_v14  ;;  %v2062_v36 = vadd.f32 %v2061_v23, %v3800_v15 }
 0x1fd   : > { %v2094_v38 = vmax.f32 %v2019_v35, 0.0  ;;  %v2095_v39 = vmax.f32 %v2062_v36, 0.0 }
 0x1ff   : > { %v2116_v40 = vpack.c.bf16 %v2094_v38, %v2092_v37  ;;  %v2117_v41 = vpack.c.bf16 %v2095_v39, %v2093_v25 }
 0x201   : > { %2273 = vmatmul.bf16.gmra.mxu0 %v2116_v40  ;;  %2316 = vmatmul.bf16.gmra.mxu1 %v2117_v41 }
 0x202   : > { %v2021_v27 = vpop.f32.mrf.mxu2  ;;  %v2064_v28 = vpop.f32.mrf.mxu3 }
 0x203   : > { %v2022_v42 = vadd.f32 %v2021_v27, %v3798_v14  ;;  %v2065_v43 = vadd.f32 %v2064_v28, %v3800_v15 }
 0x205   : > { %v2096_v48 = vmax.f32 %v2022_v42, 0.0  ;;  %v2097_v50 = vmax.f32 %v2065_v43, 0.0 }
 0x20a   : > { %v2023_v44 = vpop.f32.mrf.mxu2  ;;  %v2066_v45 = vpop.f32.mrf.mxu3 }
 0x20b   : > { %v2024_v46 = vadd.f32 %v2023_v44, %v3798_v14  ;;  %v2067_v47 = vadd.f32 %v2066_v45, %v3800_v15  ;;  %v3831_v45 = vld [vmem:[%s3875_s7] ss:$0 sm:$0xff] }
 0x20d   : > { %v2098_v51 = vmax.f32 %v2024_v46, 0.0  ;;  %v2099_v53 = vmax.f32 %v2067_v47, 0.0 }
 0x20f   : > { %v2118_v54 = vpack.c.bf16 %v2098_v51, %v2096_v48  ;;  %v2119_v55 = vpack.c.bf16 %v2099_v53, %v2097_v50 }
 0x211   : > { %2278 = vmatmul.bf16.gmra.mxu0 %v2118_v54  ;;  %2321 = vmatmul.bf16.gmra.mxu1 %v2119_v55 }
 0x212   : > { %v2026_v56 = vpop.f32.mrf.mxu2  ;;  %v2069_v57 = vpop.f32.mrf.mxu3 }
 0x213   : > { %v2027_v3 = vadd.f32 %v2026_v56, %v3798_v14  ;;  %v2070_v58 = vadd.f32 %v2069_v57, %v3800_v15 }
 0x215   : > { %v2100_v63 = vmax.f32 %v2027_v3, 0.0  ;;  %v2101_v19 = vmax.f32 %v2070_v58, 0.0 }
 0x21a   : > { %v2028_v59 = vpop.f32.mrf.mxu2  ;;  %v2071_v60 = vpop.f32.mrf.mxu3 }
 0x21b   : > { %v2029_v61 = vadd.f32 %v2028_v59, %v3798_v14  ;;  %v2072_v62 = vadd.f32 %v2071_v60, %v3800_v15 }
 0x21d   : > { %v2102_v17 = vmax.f32 %v2029_v61, 0.0  ;;  %v2103_v0 = vmax.f32 %v2072_v62, 0.0 }
 0x21f   : > { %v2120_v2 = vpack.c.bf16 %v2102_v17, %v2100_v63  ;;  %v2121_v4 = vpack.c.bf16 %v2103_v0, %v2101_v19 }
 0x221   : > { %2283 = vmatmul.bf16.gmra.mxu0 %v2120_v2  ;;  %2326 = vmatmul.bf16.gmra.mxu1 %v2121_v4 }
 0x222   : > { %v2031_v5 = vpop.f32.mrf.mxu2  ;;  %v2074_v13 = vpop.f32.mrf.mxu3 }
 0x223   : > { %v2032_v6 = vadd.f32 %v2031_v5, %v3798_v14  ;;  %v2075_v7 = vadd.f32 %v2074_v13, %v3800_v15 }
 0x225   : > { %v2104_v49 = vmax.f32 %v2032_v6, 0.0  ;;  %v2105_v8 = vmax.f32 %v2075_v7, 0.0 }
 0x22a   : > { %v2033_v10 = vpop.f32.mrf.mxu2  ;;  %v2076_v11 = vpop.f32.mrf.mxu3 }
 0x22b   : > { %v2034_v12 = vadd.f32 %v2033_v10, %v3798_v14  ;;  %v2077_v16 = vadd.f32 %v2076_v11, %v3800_v15 }
 0x22d   : > { %v2106_v52 = vmax.f32 %v2034_v12, 0.0  ;;  %v2107_v18 = vmax.f32 %v2077_v16, 0.0 }
 0x22f   : > { %v2122_v20 = vpack.c.bf16 %v2106_v52, %v2104_v49  ;;  %v2123_v9 = vpack.c.bf16 %v2107_v18, %v2105_v8 }
 0x231   : > { %2288 = vmatmul.bf16.gmra.mxu0 %v2122_v20  ;;  %2331 = vmatmul.bf16.gmra.mxu1 %v2123_v9 }
 0x232   : > { %v2036_v21 = vpop.f32.mrf.mxu2  ;;  %v2079_v22 = vpop.f32.mrf.mxu3 }
 0x233   : > { %v2037_v24 = vadd.f32 %v2036_v21, %v3798_v14  ;;  %v2080_v26 = vadd.f32 %v2079_v22, %v3800_v15 }
 0x235   : > { %v2108_v33 = vmax.f32 %v2037_v24, 0.0  ;;  %v2109_v34 = vmax.f32 %v2080_v26, 0.0 }
 0x23a   : > { %v2038_v29 = vpop.f32.mrf.mxu2  ;;  %v2081_v30 = vpop.f32.mrf.mxu3 }
 0x23b   : > { %v2039_v31 = vadd.f32 %v2038_v29, %v3798_v14  ;;  %v2082_v32 = vadd.f32 %v2081_v30, %v3800_v15 }
 0x23d   : > { %v2110_v23 = vmax.f32 %v2039_v31, 0.0  ;;  %v2111_v35 = vmax.f32 %v2082_v32, 0.0 }
 0x23f   : > { %v2124_v36 = vpack.c.bf16 %v2110_v23, %v2108_v33  ;;  %v2125_v37 = vpack.c.bf16 %v2111_v35, %v2109_v34 }
 0x241   : > { %2293 = vmatmul.bf16.gmra.mxu0 %v2124_v36  ;;  %2336 = vmatmul.bf16.gmra.mxu1 %v2125_v37 }
 0x242   : > { %v2041_v25 = vpop.f32.mrf.mxu2  ;;  %v2084_v38 = vpop.f32.mrf.mxu3 }
 0x243   : > { %v2042_v39 = vadd.f32 %v2041_v25, %v3798_v14  ;;  %v2085_v40 = vadd.f32 %v2084_v38, %v3800_v15 }
 0x245   : > { %v2112_v28 = vmax.f32 %v2042_v39, 0.0  ;;  %v2113_v42 = vmax.f32 %v2085_v40, 0.0 }
 0x247   : > { %v2126_v43 = vpack.c.bf16 %v2112_v28, %v2112_v28  ;;  %v2127_v44 = vpack.c.bf16 %v2113_v42, %v2113_v42 }
 0x24a   : > { %v2043_v41 = vpop.f32.mrf.mxu2  ;;  %v2086_v27 = vpop.f32.mrf.mxu3 }
 0x251   : > { %2298 = vmatmul.bf16.gmra.mxu0 %v2126_v43  ;;  %2341 = vmatmul.bf16.gmra.mxu1 %v2127_v44 }
 0x26e   : > { %v2269_v46 = vpop.f32.mrf.mxu0  ;;  %v2312_v47 = vpop.f32.mrf.mxu1 }
 0x26f   : > { %v2270_v14 = vadd.f32 %v3831_v45, %v2269_v46 }
 0x271   : > { %v2313_v15 = vadd.f32 %v2312_v47, %v2270_v14 }
 0x273   : > { %2346 = vst [vmem:[%s3838_s29] sm:$0xff] %v2313_v15 }
 0x276   : > { %v2271_v48 = vpop.f32.mrf.mxu0  ;;  %v2314_v50 = vpop.f32.mrf.mxu1 }
 0x277   : > { %v2272_v51 = vadd.f32 %v3831_v45, %v2271_v48 }
 0x279   : > { %v2315_v53 = vadd.f32 %v2314_v50, %v2272_v51 }
 0x27b   : > { %2347 = vst [vmem:[%s3838_s29 + $0x8] sm:$0xff] %v2315_v53 }
 0x27e   : > { %v2274_v54 = vpop.f32.mrf.mxu0  ;;  %v2317_v55 = vpop.f32.mrf.mxu1 }
 0x27f   : > { %v2275_v56 = vadd.f32 %v3831_v45, %v2274_v54 }
 0x281   : > { %v2318_v57 = vadd.f32 %v2317_v55, %v2275_v56 }
 0x283   : > { %2348 = vst [vmem:[%s3838_s29 + $0x10] sm:$0xff] %v2318_v57 }
 0x286   : > { %v2276_v3 = vpop.f32.mrf.mxu0  ;;  %v2319_v58 = vpop.f32.mrf.mxu1 }
 0x287   : > { %v2277_v59 = vadd.f32 %v3831_v45, %v2276_v3 }
 0x289   : > { %v2320_v60 = vadd.f32 %v2319_v58, %v2277_v59 }
 0x28b   : > { %2349 = vst [vmem:[%s3838_s29 + $0x18] sm:$0xff] %v2320_v60 }
 0x28e   : > { %v2279_v61 = vpop.f32.mrf.mxu0  ;;  %v2322_v62 = vpop.f32.mrf.mxu1 }
 0x28f   : > { %v2280_v63 = vadd.f32 %v3831_v45, %v2279_v61 }
 0x291   : > { %v2323_v19 = vadd.f32 %v2322_v62, %v2280_v63 }
 0x293   : > { %2350 = vst [vmem:[%s3838_s29 + $0x20] sm:$0xff] %v2323_v19 }
 0x296   : > { %v2281_v17 = vpop.f32.mrf.mxu0  ;;  %v2324_v0 = vpop.f32.mrf.mxu1 }
 0x297   : > { %v2282_v2 = vadd.f32 %v3831_v45, %v2281_v17 }
 0x299   : > { %v2325_v4 = vadd.f32 %v2324_v0, %v2282_v2 }
 0x29b   : > { %2351 = vst [vmem:[%s3838_s29 + $0x28] sm:$0xff] %v2325_v4 }
 0x29e   : > { %v2284_v5 = vpop.f32.mrf.mxu0  ;;  %v2327_v13 = vpop.f32.mrf.mxu1 }
 0x29f   : > { %v2285_v6 = vadd.f32 %v3831_v45, %v2284_v5 }
 0x2a1   : > { %v2328_v7 = vadd.f32 %v2327_v13, %v2285_v6 }
 0x2a3   : > { %2352 = vst [vmem:[%s3838_s29 + $0x30] sm:$0xff] %v2328_v7 }
 0x2a6   : > { %v2286_v10 = vpop.f32.mrf.mxu0  ;;  %v2329_v11 = vpop.f32.mrf.mxu1 }
 0x2a7   : > { %v2287_v12 = vadd.f32 %v3831_v45, %v2286_v10 }
 0x2a9   : > { %v2330_v16 = vadd.f32 %v2329_v11, %v2287_v12 }
 0x2ab   : > { %2353 = vst [vmem:[%s3838_s29 + $0x38] sm:$0xff] %v2330_v16 }
 0x2ae   : > { %v2289_v49 = vpop.f32.mrf.mxu0  ;;  %v2332_v8 = vpop.f32.mrf.mxu1 }
 0x2af   : > { %v2290_v52 = vadd.f32 %v3831_v45, %v2289_v49 }
 0x2b1   : > { %v2333_v18 = vadd.f32 %v2332_v8, %v2290_v52 }
 0x2b3   : > { %2354 = vst [vmem:[%s3838_s29 + $0x40] sm:$0xff] %v2333_v18 }
 0x2b6   : > { %v2291_v20 = vpop.f32.mrf.mxu0  ;;  %v2334_v9 = vpop.f32.mrf.mxu1 }
 0x2b7   : > { %v2292_v21 = vadd.f32 %v3831_v45, %v2291_v20 }
 0x2b9   : > { %v2335_v22 = vadd.f32 %v2334_v9, %v2292_v21 }
 0x2bb   : > { %2355 = vst [vmem:[%s3838_s29 + $0x48] sm:$0xff] %v2335_v22 }
 0x2be   : > { %v2294_v24 = vpop.f32.mrf.mxu0  ;;  %v2337_v26 = vpop.f32.mrf.mxu1 }
 0x2bf   : > { %v2295_v29 = vadd.f32 %v3831_v45, %v2294_v24 }
 0x2c1   : > { %v2338_v30 = vadd.f32 %v2337_v26, %v2295_v29 }
 0x2c3   : > { %2356 = vst [vmem:[%s3838_s29 + $0x50] sm:$0xff] %v2338_v30 }
 0x2c6   : > { %v2296_v31 = vpop.f32.mrf.mxu0  ;;  %v2339_v32 = vpop.f32.mrf.mxu1 }
 0x2c7   : > { %v2297_v33 = vadd.f32 %v3831_v45, %v2296_v31 }
 0x2c9   : > { %v2340_v34 = vadd.f32 %v2339_v32, %v2297_v33 }
 0x2cb   : > { %2357 = vst [vmem:[%s3838_s29 + $0x58] sm:$0xff] %v2340_v34 }
 0x2ce   : > { %v2299_v23 = vpop.f32.mrf.mxu0  ;;  %v2342_v35 = vpop.f32.mrf.mxu1 }
 0x2cf   : > { %v2300_v36 = vadd.f32 %v3831_v45, %v2299_v23 }
 0x2d1   : > { %v2343_v37 = vadd.f32 %v2342_v35, %v2300_v36 }
 0x2d3   : > { %2358 = vst [vmem:[%s3838_s29 + $0x60] sm:$0xff] %v2343_v37 }
 0x2d6   : > { %v2301_v25 = vpop.f32.mrf.mxu0  ;;  %v2344_v38 = vpop.f32.mrf.mxu1 }
 0x2d7 PF: > { %s35_s23 = sadd.s32 1, %s3135_s23  }
 0x2d8   : > { %p32_p9 = scmp.ge.s32.totalorder %s35_s23, 4  }
 0x2da   :  { %34 = sbr.rel (!%p32_p9) target bundleno = 5 (0x5), region = 162 }
 0x2df   :  { %2400 = vsyncpa [#allocation13], 1 }
 0x2e0   :  { %2402 = vsyncpa [#allocation13 + $0x1], 1 }
 0x2e1   :  { %2403 = vsyncpa [#allocation15], 1 }

</bundles_post_ra>
